<compile_context>
chip_gen: v7x
topology: tpu7x:2x2x1
jax: 0.10.0
libtpu: 0.0.40
codegen_flags: <defaults>
</compile_context>

<pallas_src>
import math
import jax
import jax.numpy as jnp
from jax.experimental import pallas as pl
from jax.experimental.pallas import tpu as pltpu

# ----- small, module-consistent sizes -----
B, T = 2, 8
BT = B * T
D = 32                 # retnet_embed_dim
VD = 32                # retnet_value_embed_dim
H = 4                  # retention heads
KD = D // H            # key_dim per head
HD = VD // H           # head_dim per head
FFN = 64               # retnet_ffn_embed_dim
VOCAB = 64
LAYERS = 2
EPS = 1e-6
SCALING = KD ** -0.5
EMBED_SCALE = math.sqrt(D)

# the head-folding trick (one block mask shared by k and v) needs these:
assert KD == HD and D == VD


# ---------------- in-kernel helpers ----------------
def _rms(x):
    return x * jax.lax.rsqrt(jnp.mean(x * x, axis=-1, keepdims=True) + EPS)


# ---------------- fully fused network kernel ----------------
def retnet_fused_kernel(x_ref, cos_ref, sina_ref, sinb_ref,
                        maskc_ref, hmask_ref, segones_ref, gones_ref,
                        ln1_ref, wqkvg_ref, wo_ref,
                        ln2_ref, wglu_ref, wf2_ref,
                        lnf_ref, wout_ref, out_ref):
    x = x_ref[...]                                   # (BT, D)
    cos = cos_ref[...]
    sin_a = sina_ref[...]                            # multiplies roll(z, -1)  (even lanes, -sin)
    sin_b = sinb_ref[...]                            # multiplies roll(z, +1)  (odd lanes, +sin)
    mask_cat = maskc_ref[...]                        # (BT, H*BT) decay mask, heads on lanes,
                                                     # block-diagonal over batch
    hmask = hmask_ref[...]                           # (H*BT, D) per-head lane-block indicator
    segones = segones_ref[...]                       # (H*BT, H*BT) same-head-segment indicator
    gones = gones_ref[...]                           # (VD, VD) same-head-group indicator

    def theta_shift(z):
        # rotate_every_two via lane rotations: out[2j] = -z[2j+1], out[2j+1] = z[2j]
        return (z * cos
                + pltpu.roll(z, D - 1, 1) * sin_a    # roll by -1 (mod D)
                + pltpu.roll(z, 1, 1) * sin_b)

    for layer in range(LAYERS):                      # static unroll over layers
        # ---- MultiScaleRetention sublayer (pre-norm RMSNorm with affine) ----
        h = _rms(x) * ln1_ref[layer]
        qkvg = jnp.dot(h, wqkvg_ref[layer], preferred_element_type=jnp.float32)  # (BT, 4D)
        q = qkvg[:, 0:D]
        k = qkvg[:, D:2 * D]                         # k-scaling folded into the weight
        v = qkvg[:, 2 * D:2 * D + VD]
        g = qkvg[:, 2 * D + VD:2 * D + 2 * VD]

        qr = theta_shift(q)
        kr = theta_shift(k)

        # Head-folded retention: replicate k/v H times on sublanes and mask each
        # replica to its head's lane block -> all heads in single MXU matmuls.
        k_rep = jnp.concatenate([kr] * H, axis=0) * hmask          # (H*BT, D)
        v_rep = jnp.concatenate([v] * H, axis=0) * hmask           # (H*BT, VD)

        qk = jax.lax.dot_general(qr, k_rep, (((1,), (1,)), ((), ())),
                                 preferred_element_type=jnp.float32)   # (BT, H*BT)
        qk = qk * mask_cat
        # per-(row, head) sum broadcast across the head segment via block-ones matmul
        ssum = jnp.dot(qk, segones, preferred_element_type=jnp.float32)
        qk = qk * pl.reciprocal(jnp.maximum(jnp.abs(ssum), 1.0), approx=True)
        o = jnp.dot(qk, v_rep, preferred_element_type=jnp.float32)     # (BT, VD)

        # group RMSNorm (per head_dim group, no affine) via block-ones matmul
        sumsq = jnp.dot(o * o, gones, preferred_element_type=jnp.float32)
        o = o * jax.lax.rsqrt(sumsq * (1.0 / HD) + EPS)

        x = x + jnp.dot(jax.nn.silu(g) * o, wo_ref[layer],
                        preferred_element_type=jnp.float32)            # residual (alpha=1)

        # ---- GLU feed-forward sublayer (pre-norm) ----
        h2 = _rms(x) * ln2_ref[layer]
        gf = jnp.dot(h2, wglu_ref[layer], preferred_element_type=jnp.float32)  # (BT, 2*FFN)
        gate = gf[:, 0:FFN]
        f1 = gf[:, FFN:2 * FFN]
        f = jax.nn.silu(f1) * gate
        x = x + jnp.dot(f, wf2_ref[layer], preferred_element_type=jnp.float32)

    # ---- final RMSNorm + output projection ----
    h_out = _rms(x) * lnf_ref[...]
    out_ref[...] = jnp.dot(h_out, wout_ref[...], preferred_element_type=jnp.float32)


def _full(shape):
    return pl.BlockSpec(shape, lambda i, _n=len(shape): (0,) * _n)


# ---------------- RetNetRelPos (parallel branch), JAX glue ----------------
def rel_pos(slen):
    angle = 1.0 / (10000.0 ** jnp.linspace(0.0, 1.0, KD // 2))
    angle = jnp.repeat(angle, 2)                               # [a0,a0,a1,a1,...]  (KD,)
    decay = jnp.log(1.0 - 2.0 ** (-5.0 - jnp.arange(H, dtype=jnp.float32)))
    index = jnp.arange(slen, dtype=jnp.float32)
    sin = jnp.sin(index[:, None] * angle[None, :])             # (T, KD)
    cos = jnp.cos(index[:, None] * angle[None, :])
    # exactly as the reference: mask = ones -> no masked_fill, abs diff (non-causal)
    diff = jnp.abs(index[:, None] - index[None, :])
    mask = jnp.exp(diff * decay[:, None, None])                # (H, T, T)
    mask = jnp.nan_to_num(mask)
    mask = mask / jnp.sqrt(jnp.sum(mask, axis=-1, keepdims=True))
    return sin, cos, mask


# ---------------- full forward (glue + single kernel launch) ----------------
@jax.jit
def retnet_forward(tokens, packed):
    # forward_embedding (dropout is identity at eval; no layernorm_embedding)
    x = EMBED_SCALE * jnp.take(packed['embed'], tokens, axis=0)        # (B, T, D)
    x = x.reshape(BT, D)                                               # batch folded on sublanes

    # rel-pos constants (depend only on static T -> constant folded by XLA)
    sin, cos, mask = rel_pos(T)
    sin_full = jnp.tile(sin, (1, H))                                   # (T, D)
    cos_full = jnp.tile(cos, (1, H))
    even = (jnp.arange(D) % 2) == 0
    sin_a = jnp.where(even[None, :], -sin_full, 0.0)                   # even lanes: -sin
    sin_b = jnp.where(even[None, :], 0.0, sin_full)                    # odd  lanes: +sin
    cos_bt = jnp.tile(cos_full, (B, 1))                                # (BT, D)
    sin_a_bt = jnp.tile(sin_a, (B, 1))
    sin_b_bt = jnp.tile(sin_b, (B, 1))

    # decay mask with heads concatenated along lanes, block-diagonal over batch:
    #   mask_cat[b*T+t, h*B*T + b'*T + s] = mask[h,t,s] * (b == b')
    eye_b = jnp.eye(B, dtype=jnp.float32)
    mask_cat = jnp.einsum('bc,hts->bthcs', eye_b, mask).reshape(BT, H * BT)

    # head-folding helper masks (constant folded)
    head_of_row = jnp.arange(H * BT) // BT                             # head index per replica row
    head_of_lane = jnp.arange(D) // KD
    hmask = (head_of_row[:, None] == head_of_lane[None, :]).astype(jnp.float32)   # (H*BT, D)
    segones = (head_of_row[:, None] == head_of_row[None, :]).astype(jnp.float32)  # (H*BT, H*BT)
    grp = jnp.arange(VD) // HD
    gones = (grp[:, None] == grp[None, :]).astype(jnp.float32)                    # (VD, VD)

    out = pl.pallas_call(
        retnet_fused_kernel,
        out_shape=jax.ShapeDtypeStruct((BT, VOCAB), jnp.float32),
        grid=(1,),
        in_specs=[
            _full((BT, D)), _full((BT, D)), _full((BT, D)), _full((BT, D)),
            _full((BT, H * BT)),
            _full((H * BT, D)),
            _full((H * BT, H * BT)),
            _full((VD, VD)),
            _full((LAYERS, 1, D)),
            _full((LAYERS, D, 2 * D + 2 * VD)),
            _full((LAYERS, VD, D)),
            _full((LAYERS, 1, D)),
            _full((LAYERS, D, 2 * FFN)),
            _full((LAYERS, FFN, D)),
            _full((1, D)),
            _full((D, VOCAB)),
        ],
        out_specs=_full((BT, VOCAB)),
        compiler_params=pltpu.CompilerParams(dimension_semantics=("arbitrary",)),
    )(x, cos_bt, sin_a_bt, sin_b_bt, mask_cat, hmask, segones, gones,
      packed['ln1'], packed['wqkvg'], packed['wo'],
      packed['ln2'], packed['wglu'], packed['wf2'],
      packed['final_ln'], packed['w_out'])
    return out.reshape(B, T, VOCAB)


# ---------------- deterministic parameter init (torch-style) ----------------
def init_params(key):
    keys = iter(jax.random.split(key, 64))

    def xavier(shape, gain):                 # torch Linear weight (out, in)
        out, inn = shape
        bound = gain * math.sqrt(6.0 / (inn + out))
        return jax.random.uniform(next(keys), shape, jnp.float32, -bound, bound)

    def linear_default(shape):
        out, inn = shape
        bound = 1.0 / math.sqrt(inn)
        return jax.random.uniform(next(keys), shape, jnp.float32, -bound, bound)

    params = {'embed': jax.random.normal(next(keys), (VOCAB, D), jnp.float32).at[0].set(0.0)}
    g_qk = 2.0 ** (-2.5)
    layers = []
    for _ in range(LAYERS):
        layers.append({
            'ln1': jnp.ones((1, D), jnp.float32),
            'wq': xavier((D, D), g_qk).T,
            'wk': xavier((D, D), g_qk).T,
            'wv': xavier((VD, D), g_qk).T,
            'wg': xavier((VD, D), g_qk).T,
            'wo': xavier((D, VD), 1.0).T,
            'ln2': jnp.ones((1, D), jnp.float32),
            'wgl': linear_default((FFN, D)).T,
            'wf1': linear_default((FFN, D)).T,
            'wf2': linear_default((D, FFN)).T,
        })
    params['layers'] = layers
    params['final_ln'] = jnp.ones((1, D), jnp.float32)
    params['w_out'] = (jax.random.normal(next(keys), (VOCAB, D), jnp.float32) * (D ** -0.5)).T
    return params


def pack_params(params):
    """Stack per-layer weights and fuse projections for the single fused kernel."""
    ls = params['layers']
    return {
        'embed': params['embed'],
        'ln1': jnp.stack([p['ln1'] for p in ls]),                                   # (L,1,D)
        'wqkvg': jnp.stack([jnp.concatenate(
            [p['wq'], p['wk'] * SCALING, p['wv'], p['wg']], axis=1) for p in ls]),  # (L,D,4D)
        'wo': jnp.stack([p['wo'] for p in ls]),                                     # (L,VD,D)
        'ln2': jnp.stack([p['ln2'] for p in ls]),                                   # (L,1,D)
        'wglu': jnp.stack([jnp.concatenate(
            [p['wgl'], p['wf1']], axis=1) for p in ls]),                            # (L,D,2F)
        'wf2': jnp.stack([p['wf2'] for p in ls]),                                   # (L,F,D)
        'final_ln': params['final_ln'],
        'w_out': params['w_out'],
    }


# ---------------- pure-JAX reference mirroring the PyTorch code ----------------
def ref_forward(tokens, params):
    def rmsnorm(z, w=None):
        y = z * jax.lax.rsqrt(jnp.mean(z * z, axis=-1, keepdims=True) + EPS)
        return y * w if w is not None else y

    def rotate_every_two(z):
        x1 = z[..., 0::2]
        x2 = z[..., 1::2]
        return jnp.stack((-x2, x1), axis=-1).reshape(z.shape)

    x = EMBED_SCALE * jnp.take(params['embed'], tokens, axis=0)
    sin, cos, mask = rel_pos(T)
    for p in params['layers']:
        resid = x
        h = rmsnorm(x, p['ln1'][0])
        q = h @ p['wq']
        k = (h @ p['wk']) * SCALING
        v = h @ p['wv']
        g = h @ p['wg']
        q = q.reshape(B, T, H, KD).transpose(0, 2, 1, 3)
        k = k.reshape(B, T, H, KD).transpose(0, 2, 1, 3)
        qr = q * cos + rotate_every_two(q) * sin
        kr = k * cos + rotate_every_two(k) * sin
        vr = v.reshape(B, T, H, HD).transpose(0, 2, 1, 3)
        qk = jnp.einsum('bhtk,bhsk->bhts', qr, kr) * mask[None]
        denom = jnp.maximum(jnp.abs(jnp.sum(qk, axis=-1, keepdims=True)), 1.0)
        qk = qk / denom
        out = jnp.einsum('bhts,bhsd->bhtd', qk, vr).transpose(0, 2, 1, 3)
        out = rmsnorm(out).reshape(B, T, VD)
        out = jax.nn.silu(g) * out
        x = resid + out @ p['wo']
        resid = x
        h2 = rmsnorm(x, p['ln2'][0])
        f = jax.nn.silu(h2 @ p['wf1']) * (h2 @ p['wgl'])
        x = resid + f @ p['wf2']
    x = rmsnorm(x, params['final_ln'][0])
    return x @ params['w_out']


if __name__ == "__main__":
    key = jax.random.PRNGKey(0)
    pkey, tkey = jax.random.split(key)
    params = init_params(pkey)
    packed = pack_params(params)
    tokens = jax.random.randint(tkey, (B, T), 1, VOCAB)

    out = retnet_forward(tokens, packed)
    out = jax.block_until_ready(out)
    assert out.shape == (B, T, VOCAB)

    ref = ref_forward(tokens, params)
    if not jnp.allclose(out, ref, atol=2e-3, rtol=2e-3):
        raise AssertionError("Pallas kernel output mismatch vs JAX reference")
    print("KERNEL_OK")
</pallas_src>

<mosaic_0001>
module attributes {stable_mosaic.version = 11 : i64} {
  func.func @retnet_fused_kernel(%arg0: i32, %arg1: memref<16x32xf32, #tpu.memory_space<vmem>>, %arg2: memref<16x32xf32, #tpu.memory_space<vmem>>, %arg3: memref<16x32xf32, #tpu.memory_space<vmem>>, %arg4: memref<16x32xf32, #tpu.memory_space<vmem>>, %arg5: memref<16x64xf32, #tpu.memory_space<vmem>>, %arg6: memref<64x32xf32, #tpu.memory_space<vmem>>, %arg7: memref<64x64xf32, #tpu.memory_space<vmem>>, %arg8: memref<32x32xf32, #tpu.memory_space<vmem>>, %arg9: memref<2x1x32xf32, #tpu.memory_space<vmem>>, %arg10: memref<2x32x128xf32, #tpu.memory_space<vmem>>, %arg11: memref<2x32x32xf32, #tpu.memory_space<vmem>>, %arg12: memref<2x1x32xf32, #tpu.memory_space<vmem>>, %arg13: memref<2x32x128xf32, #tpu.memory_space<vmem>>, %arg14: memref<2x64x32xf32, #tpu.memory_space<vmem>>, %arg15: memref<1x32xf32, #tpu.memory_space<vmem>>, %arg16: memref<32x64xf32, #tpu.memory_space<vmem>>, %arg17: memref<16x64xf32, #tpu.memory_space<vmem>>) attributes {dimension_semantics = [#tpu.dimension_semantics<arbitrary>], iteration_bounds = array<i64: 1>, scalar_prefetch = 0 : i64, scratch_operands = 0 : i64, tpu.core_type = #tpu.core_type<tc>, window_params = [{pipeline_mode = #tpu.pipeline_mode<synchronous>, transform_indices = @transform_0, window_bounds = array<i64: 16, 32>}, {pipeline_mode = #tpu.pipeline_mode<synchronous>, transform_indices = @transform_1, window_bounds = array<i64: 16, 32>}, {pipeline_mode = #tpu.pipeline_mode<synchronous>, transform_indices = @transform_2, window_bounds = array<i64: 16, 32>}, {pipeline_mode = #tpu.pipeline_mode<synchronous>, transform_indices = @transform_3, window_bounds = array<i64: 16, 32>}, {pipeline_mode = #tpu.pipeline_mode<synchronous>, transform_indices = @transform_4, window_bounds = array<i64: 16, 64>}, {pipeline_mode = #tpu.pipeline_mode<synchronous>, transform_indices = @transform_5, window_bounds = array<i64: 64, 32>}, {pipeline_mode = #tpu.pipeline_mode<synchronous>, transform_indices = @transform_6, window_bounds = array<i64: 64, 64>}, {pipeline_mode = #tpu.pipeline_mode<synchronous>, transform_indices = @transform_7, window_bounds = array<i64: 32, 32>}, {pipeline_mode = #tpu.pipeline_mode<synchronous>, transform_indices = @transform_8, window_bounds = array<i64: 2, 1, 32>}, {pipeline_mode = #tpu.pipeline_mode<synchronous>, transform_indices = @transform_9, window_bounds = array<i64: 2, 32, 128>}, {pipeline_mode = #tpu.pipeline_mode<synchronous>, transform_indices = @transform_10, window_bounds = array<i64: 2, 32, 32>}, {pipeline_mode = #tpu.pipeline_mode<synchronous>, transform_indices = @transform_11, window_bounds = array<i64: 2, 1, 32>}, {pipeline_mode = #tpu.pipeline_mode<synchronous>, transform_indices = @transform_12, window_bounds = array<i64: 2, 32, 128>}, {pipeline_mode = #tpu.pipeline_mode<synchronous>, transform_indices = @transform_13, window_bounds = array<i64: 2, 64, 32>}, {pipeline_mode = #tpu.pipeline_mode<synchronous>, transform_indices = @transform_14, window_bounds = array<i64: 1, 32>}, {pipeline_mode = #tpu.pipeline_mode<synchronous>, transform_indices = @transform_15, window_bounds = array<i64: 32, 64>}, {pipeline_mode = #tpu.pipeline_mode<synchronous>, transform_indices = @transform_16, window_bounds = array<i64: 16, 64>}]} {
    %c0 = arith.constant 0 : index
    %c0_0 = arith.constant 0 : index
    %0 = vector.load %arg1[%c0, %c0_0] : memref<16x32xf32, #tpu.memory_space<vmem>>, vector<16x32xf32>
    %c0_1 = arith.constant 0 : index
    %c0_2 = arith.constant 0 : index
    %1 = vector.load %arg2[%c0_1, %c0_2] : memref<16x32xf32, #tpu.memory_space<vmem>>, vector<16x32xf32>
    %c0_3 = arith.constant 0 : index
    %c0_4 = arith.constant 0 : index
    %2 = vector.load %arg3[%c0_3, %c0_4] : memref<16x32xf32, #tpu.memory_space<vmem>>, vector<16x32xf32>
    %c0_5 = arith.constant 0 : index
    %c0_6 = arith.constant 0 : index
    %3 = vector.load %arg4[%c0_5, %c0_6] : memref<16x32xf32, #tpu.memory_space<vmem>>, vector<16x32xf32>
    %c0_7 = arith.constant 0 : index
    %c0_8 = arith.constant 0 : index
    %4 = vector.load %arg5[%c0_7, %c0_8] : memref<16x64xf32, #tpu.memory_space<vmem>>, vector<16x64xf32>
    %c0_9 = arith.constant 0 : index
    %c0_10 = arith.constant 0 : index
    %5 = vector.load %arg6[%c0_9, %c0_10] : memref<64x32xf32, #tpu.memory_space<vmem>>, vector<64x32xf32>
    %c0_11 = arith.constant 0 : index
    %c0_12 = arith.constant 0 : index
    %6 = vector.load %arg7[%c0_11, %c0_12] : memref<64x64xf32, #tpu.memory_space<vmem>>, vector<64x64xf32>
    %c0_13 = arith.constant 0 : index
    %c0_14 = arith.constant 0 : index
    %7 = vector.load %arg8[%c0_13, %c0_14] : memref<32x32xf32, #tpu.memory_space<vmem>>, vector<32x32xf32>
    %8 = arith.mulf %0, %0 : vector<16x32xf32>
    %cst = arith.constant dense<0.000000e+00> : vector<16xf32>
    %9 = vector.multi_reduction <add>, %8, %cst [1] : vector<16x32xf32> to vector<16xf32>
    %10 = vector.shape_cast %9 : vector<16xf32> to vector<16x1xf32>
    %cst_15 = arith.constant 3.200000e+01 : f32
    %11 = vector.broadcast %cst_15 : f32 to vector<16x1xf32>
    %12 = arith.divf %10, %11 : vector<16x1xf32>
    %cst_16 = arith.constant 9.99999997E-7 : f32
    %13 = vector.broadcast %cst_16 : f32 to vector<16x1xf32>
    %14 = arith.addf %12, %13 : vector<16x1xf32>
    %15 = math.rsqrt %14 : vector<16x1xf32>
    %16 = vector.broadcast %15 : vector<16x1xf32> to vector<16x32xf32>
    %17 = arith.mulf %0, %16 : vector<16x32xf32>
    %c0_17 = arith.constant 0 : index
    %c0_18 = arith.constant 0 : index
    %c0_19 = arith.constant 0 : index
    %18 = vector.load %arg9[%c0_17, %c0_18, %c0_19] : memref<2x1x32xf32, #tpu.memory_space<vmem>>, vector<1x1x32xf32>
    %19 = vector.shape_cast %18 : vector<1x1x32xf32> to vector<1x32xf32>
    %20 = vector.broadcast %19 : vector<1x32xf32> to vector<16x32xf32>
    %21 = arith.mulf %17, %20 : vector<16x32xf32>
    %c0_20 = arith.constant 0 : index
    %c0_21 = arith.constant 0 : index
    %c0_22 = arith.constant 0 : index
    %22 = vector.load %arg10[%c0_20, %c0_21, %c0_22] : memref<2x32x128xf32, #tpu.memory_space<vmem>>, vector<1x32x128xf32>
    %23 = vector.shape_cast %22 : vector<1x32x128xf32> to vector<32x128xf32>
    %cst_23 = arith.constant dense<0.000000e+00> : vector<16x128xf32>
    %24 = tpu.matmul %21, %23, %cst_23 {dimension_numbers = #tpu.dot_dimension_numbers<[1], [0], [0], [1], [0, 0, 1, 1], [], []>} : vector<16x32xf32>, vector<32x128xf32>, vector<16x128xf32> -> vector<16x128xf32>
    %25 = vector.extract_strided_slice %24 {offsets = [0, 0], sizes = [16, 32], strides = [1, 1]} : vector<16x128xf32> to vector<16x32xf32>
    %26 = vector.extract_strided_slice %24 {offsets = [0, 32], sizes = [16, 32], strides = [1, 1]} : vector<16x128xf32> to vector<16x32xf32>
    %27 = vector.extract_strided_slice %24 {offsets = [0, 64], sizes = [16, 32], strides = [1, 1]} : vector<16x128xf32> to vector<16x32xf32>
    %28 = vector.extract_strided_slice %24 {offsets = [0, 96], sizes = [16, 32], strides = [1, 1]} : vector<16x128xf32> to vector<16x32xf32>
    %29 = arith.mulf %25, %1 : vector<16x32xf32>
    %c31_i32 = arith.constant 31 : i32
    %30 = tpu.dynamic_rotate %25 by %c31_i32 dim 1 : vector<16x32xf32>, i32 -> vector<16x32xf32>
    %31 = arith.mulf %30, %2 : vector<16x32xf32>
    %32 = arith.addf %29, %31 : vector<16x32xf32>
    %c1_i32 = arith.constant 1 : i32
    %33 = tpu.dynamic_rotate %25 by %c1_i32 dim 1 : vector<16x32xf32>, i32 -> vector<16x32xf32>
    %34 = arith.mulf %33, %3 : vector<16x32xf32>
    %35 = arith.addf %32, %34 : vector<16x32xf32>
    %36 = arith.mulf %26, %1 : vector<16x32xf32>
    %c31_i32_24 = arith.constant 31 : i32
    %37 = tpu.dynamic_rotate %26 by %c31_i32_24 dim 1 : vector<16x32xf32>, i32 -> vector<16x32xf32>
    %38 = arith.mulf %37, %2 : vector<16x32xf32>
    %39 = arith.addf %36, %38 : vector<16x32xf32>
    %c1_i32_25 = arith.constant 1 : i32
    %40 = tpu.dynamic_rotate %26 by %c1_i32_25 dim 1 : vector<16x32xf32>, i32 -> vector<16x32xf32>
    %41 = arith.mulf %40, %3 : vector<16x32xf32>
    %42 = arith.addf %39, %41 : vector<16x32xf32>
    %43 = tpu.concatenate %42, %42, %42, %42 in 0 : vector<16x32xf32>, vector<16x32xf32>, vector<16x32xf32>, vector<16x32xf32> -> vector<64x32xf32>
    %44 = arith.mulf %43, %5 : vector<64x32xf32>
    %45 = tpu.concatenate %27, %27, %27, %27 in 0 : vector<16x32xf32>, vector<16x32xf32>, vector<16x32xf32>, vector<16x32xf32> -> vector<64x32xf32>
    %46 = arith.mulf %45, %5 : vector<64x32xf32>
    %cst_26 = arith.constant dense<0.000000e+00> : vector<16x64xf32>
    %47 = tpu.matmul %35, %44, %cst_26 {dimension_numbers = #tpu.dot_dimension_numbers<[1], [1], [0], [0], [0, 0, 1, 0], [], []>} : vector<16x32xf32>, vector<64x32xf32>, vector<16x64xf32> -> vector<16x64xf32>
    %48 = arith.mulf %47, %4 : vector<16x64xf32>
    %cst_27 = arith.constant dense<0.000000e+00> : vector<16x64xf32>
    %49 = tpu.matmul %48, %6, %cst_27 {dimension_numbers = #tpu.dot_dimension_numbers<[1], [0], [0], [1], [0, 0, 1, 1], [], []>} : vector<16x64xf32>, vector<64x64xf32>, vector<16x64xf32> -> vector<16x64xf32>
    %50 = math.absf %49 : vector<16x64xf32>
    %cst_28 = arith.constant 1.000000e+00 : f32
    %51 = vector.broadcast %cst_28 : f32 to vector<16x64xf32>
    %52 = arith.maximumf %50, %51 : vector<16x64xf32>
    %53 = tpu.reciprocal %52 {approx = true} : vector<16x64xf32> -> vector<16x64xf32>
    %54 = arith.mulf %48, %53 : vector<16x64xf32>
    %cst_29 = arith.constant dense<0.000000e+00> : vector<16x32xf32>
    %55 = tpu.matmul %54, %46, %cst_29 {dimension_numbers = #tpu.dot_dimension_numbers<[1], [0], [0], [1], [0, 0, 1, 1], [], []>} : vector<16x64xf32>, vector<64x32xf32>, vector<16x32xf32> -> vector<16x32xf32>
    %56 = arith.mulf %55, %55 : vector<16x32xf32>
    %cst_30 = arith.constant dense<0.000000e+00> : vector<16x32xf32>
    %57 = tpu.matmul %56, %7, %cst_30 {dimension_numbers = #tpu.dot_dimension_numbers<[1], [0], [0], [1], [0, 0, 1, 1], [], []>} : vector<16x32xf32>, vector<32x32xf32>, vector<16x32xf32> -> vector<16x32xf32>
    %cst_31 = arith.constant 1.250000e-01 : f32
    %58 = vector.broadcast %cst_31 : f32 to vector<16x32xf32>
    %59 = arith.mulf %57, %58 : vector<16x32xf32>
    %cst_32 = arith.constant 9.99999997E-7 : f32
    %60 = vector.broadcast %cst_32 : f32 to vector<16x32xf32>
    %61 = arith.addf %59, %60 : vector<16x32xf32>
    %62 = math.rsqrt %61 : vector<16x32xf32>
    %63 = arith.mulf %55, %62 : vector<16x32xf32>
    %64 = arith.negf %28 : vector<16x32xf32>
    %65 = math.exp %64 : vector<16x32xf32>
    %cst_33 = arith.constant 1.000000e+00 : f32
    %66 = vector.broadcast %cst_33 : f32 to vector<16x32xf32>
    %67 = arith.addf %66, %65 : vector<16x32xf32>
    %68 = arith.divf %66, %67 : vector<16x32xf32>
    %69 = arith.mulf %28, %68 : vector<16x32xf32>
    %70 = arith.mulf %69, %63 : vector<16x32xf32>
    %c0_34 = arith.constant 0 : index
    %c0_35 = arith.constant 0 : index
    %c0_36 = arith.constant 0 : index
    %71 = vector.load %arg11[%c0_34, %c0_35, %c0_36] : memref<2x32x32xf32, #tpu.memory_space<vmem>>, vector<1x32x32xf32>
    %72 = vector.shape_cast %71 : vector<1x32x32xf32> to vector<32x32xf32>
    %cst_37 = arith.constant dense<0.000000e+00> : vector<16x32xf32>
    %73 = tpu.matmul %70, %72, %cst_37 {dimension_numbers = #tpu.dot_dimension_numbers<[1], [0], [0], [1], [0, 0, 1, 1], [], []>} : vector<16x32xf32>, vector<32x32xf32>, vector<16x32xf32> -> vector<16x32xf32>
    %74 = arith.addf %0, %73 : vector<16x32xf32>
    %75 = arith.mulf %74, %74 : vector<16x32xf32>
    %cst_38 = arith.constant dense<0.000000e+00> : vector<16xf32>
    %76 = vector.multi_reduction <add>, %75, %cst_38 [1] : vector<16x32xf32> to vector<16xf32>
    %77 = vector.shape_cast %76 : vector<16xf32> to vector<16x1xf32>
    %cst_39 = arith.constant 3.200000e+01 : f32
    %78 = vector.broadcast %cst_39 : f32 to vector<16x1xf32>
    %79 = arith.divf %77, %78 : vector<16x1xf32>
    %cst_40 = arith.constant 9.99999997E-7 : f32
    %80 = vector.broadcast %cst_40 : f32 to vector<16x1xf32>
    %81 = arith.addf %79, %80 : vector<16x1xf32>
    %82 = math.rsqrt %81 : vector<16x1xf32>
    %83 = vector.broadcast %82 : vector<16x1xf32> to vector<16x32xf32>
    %84 = arith.mulf %74, %83 : vector<16x32xf32>
    %c0_41 = arith.constant 0 : index
    %c0_42 = arith.constant 0 : index
    %c0_43 = arith.constant 0 : index
    %85 = vector.load %arg12[%c0_41, %c0_42, %c0_43] : memref<2x1x32xf32, #tpu.memory_space<vmem>>, vector<1x1x32xf32>
    %86 = vector.shape_cast %85 : vector<1x1x32xf32> to vector<1x32xf32>
    %87 = vector.broadcast %86 : vector<1x32xf32> to vector<16x32xf32>
    %88 = arith.mulf %84, %87 : vector<16x32xf32>
    %c0_44 = arith.constant 0 : index
    %c0_45 = arith.constant 0 : index
    %c0_46 = arith.constant 0 : index
    %89 = vector.load %arg13[%c0_44, %c0_45, %c0_46] : memref<2x32x128xf32, #tpu.memory_space<vmem>>, vector<1x32x128xf32>
    %90 = vector.shape_cast %89 : vector<1x32x128xf32> to vector<32x128xf32>
    %cst_47 = arith.constant dense<0.000000e+00> : vector<16x128xf32>
    %91 = tpu.matmul %88, %90, %cst_47 {dimension_numbers = #tpu.dot_dimension_numbers<[1], [0], [0], [1], [0, 0, 1, 1], [], []>} : vector<16x32xf32>, vector<32x128xf32>, vector<16x128xf32> -> vector<16x128xf32>
    %92 = vector.extract_strided_slice %91 {offsets = [0, 0], sizes = [16, 64], strides = [1, 1]} : vector<16x128xf32> to vector<16x64xf32>
    %93 = vector.extract_strided_slice %91 {offsets = [0, 64], sizes = [16, 64], strides = [1, 1]} : vector<16x128xf32> to vector<16x64xf32>
    %94 = arith.negf %93 : vector<16x64xf32>
    %95 = math.exp %94 : vector<16x64xf32>
    %cst_48 = arith.constant 1.000000e+00 : f32
    %96 = vector.broadcast %cst_48 : f32 to vector<16x64xf32>
    %97 = arith.addf %96, %95 : vector<16x64xf32>
    %98 = arith.divf %96, %97 : vector<16x64xf32>
    %99 = arith.mulf %93, %98 : vector<16x64xf32>
    %100 = arith.mulf %99, %92 : vector<16x64xf32>
    %c0_49 = arith.constant 0 : index
    %c0_50 = arith.constant 0 : index
    %c0_51 = arith.constant 0 : index
    %101 = vector.load %arg14[%c0_49, %c0_50, %c0_51] : memref<2x64x32xf32, #tpu.memory_space<vmem>>, vector<1x64x32xf32>
    %102 = vector.shape_cast %101 : vector<1x64x32xf32> to vector<64x32xf32>
    %cst_52 = arith.constant dense<0.000000e+00> : vector<16x32xf32>
    %103 = tpu.matmul %100, %102, %cst_52 {dimension_numbers = #tpu.dot_dimension_numbers<[1], [0], [0], [1], [0, 0, 1, 1], [], []>} : vector<16x64xf32>, vector<64x32xf32>, vector<16x32xf32> -> vector<16x32xf32>
    %104 = arith.addf %74, %103 : vector<16x32xf32>
    %105 = arith.mulf %104, %104 : vector<16x32xf32>
    %cst_53 = arith.constant dense<0.000000e+00> : vector<16xf32>
    %106 = vector.multi_reduction <add>, %105, %cst_53 [1] : vector<16x32xf32> to vector<16xf32>
    %107 = vector.shape_cast %106 : vector<16xf32> to vector<16x1xf32>
    %cst_54 = arith.constant 3.200000e+01 : f32
    %108 = vector.broadcast %cst_54 : f32 to vector<16x1xf32>
    %109 = arith.divf %107, %108 : vector<16x1xf32>
    %cst_55 = arith.constant 9.99999997E-7 : f32
    %110 = vector.broadcast %cst_55 : f32 to vector<16x1xf32>
    %111 = arith.addf %109, %110 : vector<16x1xf32>
    %112 = math.rsqrt %111 : vector<16x1xf32>
    %113 = vector.broadcast %112 : vector<16x1xf32> to vector<16x32xf32>
    %114 = arith.mulf %104, %113 : vector<16x32xf32>
    %c1 = arith.constant 1 : index
    %c0_56 = arith.constant 0 : index
    %c0_57 = arith.constant 0 : index
    %115 = vector.load %arg9[%c1, %c0_56, %c0_57] : memref<2x1x32xf32, #tpu.memory_space<vmem>>, vector<1x1x32xf32>
    %116 = vector.shape_cast %115 : vector<1x1x32xf32> to vector<1x32xf32>
    %117 = vector.broadcast %116 : vector<1x32xf32> to vector<16x32xf32>
    %118 = arith.mulf %114, %117 : vector<16x32xf32>
    %c1_58 = arith.constant 1 : index
    %c0_59 = arith.constant 0 : index
    %c0_60 = arith.constant 0 : index
    %119 = vector.load %arg10[%c1_58, %c0_59, %c0_60] : memref<2x32x128xf32, #tpu.memory_space<vmem>>, vector<1x32x128xf32>
    %120 = vector.shape_cast %119 : vector<1x32x128xf32> to vector<32x128xf32>
    %cst_61 = arith.constant dense<0.000000e+00> : vector<16x128xf32>
    %121 = tpu.matmul %118, %120, %cst_61 {dimension_numbers = #tpu.dot_dimension_numbers<[1], [0], [0], [1], [0, 0, 1, 1], [], []>} : vector<16x32xf32>, vector<32x128xf32>, vector<16x128xf32> -> vector<16x128xf32>
    %122 = vector.extract_strided_slice %121 {offsets = [0, 0], sizes = [16, 32], strides = [1, 1]} : vector<16x128xf32> to vector<16x32xf32>
    %123 = vector.extract_strided_slice %121 {offsets = [0, 32], sizes = [16, 32], strides = [1, 1]} : vector<16x128xf32> to vector<16x32xf32>
    %124 = vector.extract_strided_slice %121 {offsets = [0, 64], sizes = [16, 32], strides = [1, 1]} : vector<16x128xf32> to vector<16x32xf32>
    %125 = vector.extract_strided_slice %121 {offsets = [0, 96], sizes = [16, 32], strides = [1, 1]} : vector<16x128xf32> to vector<16x32xf32>
    %126 = arith.mulf %122, %1 : vector<16x32xf32>
    %c31_i32_62 = arith.constant 31 : i32
    %127 = tpu.dynamic_rotate %122 by %c31_i32_62 dim 1 : vector<16x32xf32>, i32 -> vector<16x32xf32>
    %128 = arith.mulf %127, %2 : vector<16x32xf32>
    %129 = arith.addf %126, %128 : vector<16x32xf32>
    %c1_i32_63 = arith.constant 1 : i32
    %130 = tpu.dynamic_rotate %122 by %c1_i32_63 dim 1 : vector<16x32xf32>, i32 -> vector<16x32xf32>
    %131 = arith.mulf %130, %3 : vector<16x32xf32>
    %132 = arith.addf %129, %131 : vector<16x32xf32>
    %133 = arith.mulf %123, %1 : vector<16x32xf32>
    %c31_i32_64 = arith.constant 31 : i32
    %134 = tpu.dynamic_rotate %123 by %c31_i32_64 dim 1 : vector<16x32xf32>, i32 -> vector<16x32xf32>
    %135 = arith.mulf %134, %2 : vector<16x32xf32>
    %136 = arith.addf %133, %135 : vector<16x32xf32>
    %c1_i32_65 = arith.constant 1 : i32
    %137 = tpu.dynamic_rotate %123 by %c1_i32_65 dim 1 : vector<16x32xf32>, i32 -> vector<16x32xf32>
    %138 = arith.mulf %137, %3 : vector<16x32xf32>
    %139 = arith.addf %136, %138 : vector<16x32xf32>
    %140 = tpu.concatenate %139, %139, %139, %139 in 0 : vector<16x32xf32>, vector<16x32xf32>, vector<16x32xf32>, vector<16x32xf32> -> vector<64x32xf32>
    %141 = arith.mulf %140, %5 : vector<64x32xf32>
    %142 = tpu.concatenate %124, %124, %124, %124 in 0 : vector<16x32xf32>, vector<16x32xf32>, vector<16x32xf32>, vector<16x32xf32> -> vector<64x32xf32>
    %143 = arith.mulf %142, %5 : vector<64x32xf32>
    %cst_66 = arith.constant dense<0.000000e+00> : vector<16x64xf32>
    %144 = tpu.matmul %132, %141, %cst_66 {dimension_numbers = #tpu.dot_dimension_numbers<[1], [1], [0], [0], [0, 0, 1, 0], [], []>} : vector<16x32xf32>, vector<64x32xf32>, vector<16x64xf32> -> vector<16x64xf32>
    %145 = arith.mulf %144, %4 : vector<16x64xf32>
    %cst_67 = arith.constant dense<0.000000e+00> : vector<16x64xf32>
    %146 = tpu.matmul %145, %6, %cst_67 {dimension_numbers = #tpu.dot_dimension_numbers<[1], [0], [0], [1], [0, 0, 1, 1], [], []>} : vector<16x64xf32>, vector<64x64xf32>, vector<16x64xf32> -> vector<16x64xf32>
    %147 = math.absf %146 : vector<16x64xf32>
    %cst_68 = arith.constant 1.000000e+00 : f32
    %148 = vector.broadcast %cst_68 : f32 to vector<16x64xf32>
    %149 = arith.maximumf %147, %148 : vector<16x64xf32>
    %150 = tpu.reciprocal %149 {approx = true} : vector<16x64xf32> -> vector<16x64xf32>
    %151 = arith.mulf %145, %150 : vector<16x64xf32>
    %cst_69 = arith.constant dense<0.000000e+00> : vector<16x32xf32>
    %152 = tpu.matmul %151, %143, %cst_69 {dimension_numbers = #tpu.dot_dimension_numbers<[1], [0], [0], [1], [0, 0, 1, 1], [], []>} : vector<16x64xf32>, vector<64x32xf32>, vector<16x32xf32> -> vector<16x32xf32>
    %153 = arith.mulf %152, %152 : vector<16x32xf32>
    %cst_70 = arith.constant dense<0.000000e+00> : vector<16x32xf32>
    %154 = tpu.matmul %153, %7, %cst_70 {dimension_numbers = #tpu.dot_dimension_numbers<[1], [0], [0], [1], [0, 0, 1, 1], [], []>} : vector<16x32xf32>, vector<32x32xf32>, vector<16x32xf32> -> vector<16x32xf32>
    %cst_71 = arith.constant 1.250000e-01 : f32
    %155 = vector.broadcast %cst_71 : f32 to vector<16x32xf32>
    %156 = arith.mulf %154, %155 : vector<16x32xf32>
    %cst_72 = arith.constant 9.99999997E-7 : f32
    %157 = vector.broadcast %cst_72 : f32 to vector<16x32xf32>
    %158 = arith.addf %156, %157 : vector<16x32xf32>
    %159 = math.rsqrt %158 : vector<16x32xf32>
    %160 = arith.mulf %152, %159 : vector<16x32xf32>
    %161 = arith.negf %125 : vector<16x32xf32>
    %162 = math.exp %161 : vector<16x32xf32>
    %cst_73 = arith.constant 1.000000e+00 : f32
    %163 = vector.broadcast %cst_73 : f32 to vector<16x32xf32>
    %164 = arith.addf %163, %162 : vector<16x32xf32>
    %165 = arith.divf %163, %164 : vector<16x32xf32>
    %166 = arith.mulf %125, %165 : vector<16x32xf32>
    %167 = arith.mulf %166, %160 : vector<16x32xf32>
    %c1_74 = arith.constant 1 : index
    %c0_75 = arith.constant 0 : index
    %c0_76 = arith.constant 0 : index
    %168 = vector.load %arg11[%c1_74, %c0_75, %c0_76] : memref<2x32x32xf32, #tpu.memory_space<vmem>>, vector<1x32x32xf32>
    %169 = vector.shape_cast %168 : vector<1x32x32xf32> to vector<32x32xf32>
    %cst_77 = arith.constant dense<0.000000e+00> : vector<16x32xf32>
    %170 = tpu.matmul %167, %169, %cst_77 {dimension_numbers = #tpu.dot_dimension_numbers<[1], [0], [0], [1], [0, 0, 1, 1], [], []>} : vector<16x32xf32>, vector<32x32xf32>, vector<16x32xf32> -> vector<16x32xf32>
    %171 = arith.addf %104, %170 : vector<16x32xf32>
    %172 = arith.mulf %171, %171 : vector<16x32xf32>
    %cst_78 = arith.constant dense<0.000000e+00> : vector<16xf32>
    %173 = vector.multi_reduction <add>, %172, %cst_78 [1] : vector<16x32xf32> to vector<16xf32>
    %174 = vector.shape_cast %173 : vector<16xf32> to vector<16x1xf32>
    %cst_79 = arith.constant 3.200000e+01 : f32
    %175 = vector.broadcast %cst_79 : f32 to vector<16x1xf32>
    %176 = arith.divf %174, %175 : vector<16x1xf32>
    %cst_80 = arith.constant 9.99999997E-7 : f32
    %177 = vector.broadcast %cst_80 : f32 to vector<16x1xf32>
    %178 = arith.addf %176, %177 : vector<16x1xf32>
    %179 = math.rsqrt %178 : vector<16x1xf32>
    %180 = vector.broadcast %179 : vector<16x1xf32> to vector<16x32xf32>
    %181 = arith.mulf %171, %180 : vector<16x32xf32>
    %c1_81 = arith.constant 1 : index
    %c0_82 = arith.constant 0 : index
    %c0_83 = arith.constant 0 : index
    %182 = vector.load %arg12[%c1_81, %c0_82, %c0_83] : memref<2x1x32xf32, #tpu.memory_space<vmem>>, vector<1x1x32xf32>
    %183 = vector.shape_cast %182 : vector<1x1x32xf32> to vector<1x32xf32>
    %184 = vector.broadcast %183 : vector<1x32xf32> to vector<16x32xf32>
    %185 = arith.mulf %181, %184 : vector<16x32xf32>
    %c1_84 = arith.constant 1 : index
    %c0_85 = arith.constant 0 : index
    %c0_86 = arith.constant 0 : index
    %186 = vector.load %arg13[%c1_84, %c0_85, %c0_86] : memref<2x32x128xf32, #tpu.memory_space<vmem>>, vector<1x32x128xf32>
    %187 = vector.shape_cast %186 : vector<1x32x128xf32> to vector<32x128xf32>
    %cst_87 = arith.constant dense<0.000000e+00> : vector<16x128xf32>
    %188 = tpu.matmul %185, %187, %cst_87 {dimension_numbers = #tpu.dot_dimension_numbers<[1], [0], [0], [1], [0, 0, 1, 1], [], []>} : vector<16x32xf32>, vector<32x128xf32>, vector<16x128xf32> -> vector<16x128xf32>
    %189 = vector.extract_strided_slice %188 {offsets = [0, 0], sizes = [16, 64], strides = [1, 1]} : vector<16x128xf32> to vector<16x64xf32>
    %190 = vector.extract_strided_slice %188 {offsets = [0, 64], sizes = [16, 64], strides = [1, 1]} : vector<16x128xf32> to vector<16x64xf32>
    %191 = arith.negf %190 : vector<16x64xf32>
    %192 = math.exp %191 : vector<16x64xf32>
    %cst_88 = arith.constant 1.000000e+00 : f32
    %193 = vector.broadcast %cst_88 : f32 to vector<16x64xf32>
    %194 = arith.addf %193, %192 : vector<16x64xf32>
    %195 = arith.divf %193, %194 : vector<16x64xf32>
    %196 = arith.mulf %190, %195 : vector<16x64xf32>
    %197 = arith.mulf %196, %189 : vector<16x64xf32>
    %c1_89 = arith.constant 1 : index
    %c0_90 = arith.constant 0 : index
    %c0_91 = arith.constant 0 : index
    %198 = vector.load %arg14[%c1_89, %c0_90, %c0_91] : memref<2x64x32xf32, #tpu.memory_space<vmem>>, vector<1x64x32xf32>
    %199 = vector.shape_cast %198 : vector<1x64x32xf32> to vector<64x32xf32>
    %cst_92 = arith.constant dense<0.000000e+00> : vector<16x32xf32>
    %200 = tpu.matmul %197, %199, %cst_92 {dimension_numbers = #tpu.dot_dimension_numbers<[1], [0], [0], [1], [0, 0, 1, 1], [], []>} : vector<16x64xf32>, vector<64x32xf32>, vector<16x32xf32> -> vector<16x32xf32>
    %201 = arith.addf %171, %200 : vector<16x32xf32>
    %202 = arith.mulf %201, %201 : vector<16x32xf32>
    %cst_93 = arith.constant dense<0.000000e+00> : vector<16xf32>
    %203 = vector.multi_reduction <add>, %202, %cst_93 [1] : vector<16x32xf32> to vector<16xf32>
    %204 = vector.shape_cast %203 : vector<16xf32> to vector<16x1xf32>
    %cst_94 = arith.constant 3.200000e+01 : f32
    %205 = vector.broadcast %cst_94 : f32 to vector<16x1xf32>
    %206 = arith.divf %204, %205 : vector<16x1xf32>
    %cst_95 = arith.constant 9.99999997E-7 : f32
    %207 = vector.broadcast %cst_95 : f32 to vector<16x1xf32>
    %208 = arith.addf %206, %207 : vector<16x1xf32>
    %209 = math.rsqrt %208 : vector<16x1xf32>
    %210 = vector.broadcast %209 : vector<16x1xf32> to vector<16x32xf32>
    %211 = arith.mulf %201, %210 : vector<16x32xf32>
    %c0_96 = arith.constant 0 : index
    %c0_97 = arith.constant 0 : index
    %212 = vector.load %arg15[%c0_96, %c0_97] : memref<1x32xf32, #tpu.memory_space<vmem>>, vector<1x32xf32>
    %213 = vector.broadcast %212 : vector<1x32xf32> to vector<16x32xf32>
    %214 = arith.mulf %211, %213 : vector<16x32xf32>
    %c0_98 = arith.constant 0 : index
    %c0_99 = arith.constant 0 : index
    %215 = vector.load %arg16[%c0_98, %c0_99] : memref<32x64xf32, #tpu.memory_space<vmem>>, vector<32x64xf32>
    %cst_100 = arith.constant dense<0.000000e+00> : vector<16x64xf32>
    %216 = tpu.matmul %214, %215, %cst_100 {dimension_numbers = #tpu.dot_dimension_numbers<[1], [0], [0], [1], [0, 0, 1, 1], [], []>} : vector<16x32xf32>, vector<32x64xf32>, vector<16x64xf32> -> vector<16x64xf32>
    %c0_101 = arith.constant 0 : index
    %c0_102 = arith.constant 0 : index
    %217 = vector.load %arg17[%c0_101, %c0_102] : memref<16x64xf32, #tpu.memory_space<vmem>>, vector<16x64xf32>
    tpu.vector_store %arg17[%c0_101, %c0_102], %216 {strides = array<i32>} : memref<16x64xf32, #tpu.memory_space<vmem>>, vector<16x64xf32>,
    return
  }
  func.func @transform_0(%arg0: i32) -> (i32, i32) {
    %c0_i32 = arith.constant 0 : i32
    %c0_i32_0 = arith.constant 0 : i32
    %c0_i32_1 = arith.constant 0 : i32
    return %c0_i32, %c0_i32_0 : i32, i32
  }
  func.func @transform_1(%arg0: i32) -> (i32, i32) {
    %c0_i32 = arith.constant 0 : i32
    %c0_i32_0 = arith.constant 0 : i32
    %c0_i32_1 = arith.constant 0 : i32
    return %c0_i32, %c0_i32_0 : i32, i32
  }
  func.func @transform_2(%arg0: i32) -> (i32, i32) {
    %c0_i32 = arith.constant 0 : i32
    %c0_i32_0 = arith.constant 0 : i32
    %c0_i32_1 = arith.constant 0 : i32
    return %c0_i32, %c0_i32_0 : i32, i32
  }
  func.func @transform_3(%arg0: i32) -> (i32, i32) {
    %c0_i32 = arith.constant 0 : i32
    %c0_i32_0 = arith.constant 0 : i32
    %c0_i32_1 = arith.constant 0 : i32
    return %c0_i32, %c0_i32_0 : i32, i32
  }
  func.func @transform_4(%arg0: i32) -> (i32, i32) {
    %c0_i32 = arith.constant 0 : i32
    %c0_i32_0 = arith.constant 0 : i32
    %c0_i32_1 = arith.constant 0 : i32
    return %c0_i32, %c0_i32_0 : i32, i32
  }
  func.func @transform_5(%arg0: i32) -> (i32, i32) {
    %c0_i32 = arith.constant 0 : i32
    %c0_i32_0 = arith.constant 0 : i32
    %c0_i32_1 = arith.constant 0 : i32
    return %c0_i32, %c0_i32_0 : i32, i32
  }
  func.func @transform_6(%arg0: i32) -> (i32, i32) {
    %c0_i32 = arith.constant 0 : i32
    %c0_i32_0 = arith.constant 0 : i32
    %c0_i32_1 = arith.constant 0 : i32
    return %c0_i32, %c0_i32_0 : i32, i32
  }
  func.func @transform_7(%arg0: i32) -> (i32, i32) {
    %c0_i32 = arith.constant 0 : i32
    %c0_i32_0 = arith.constant 0 : i32
    %c0_i32_1 = arith.constant 0 : i32
    return %c0_i32, %c0_i32_0 : i32, i32
  }
  func.func @transform_8(%arg0: i32) -> (i32, i32, i32) {
    %c0_i32 = arith.constant 0 : i32
    %c0_i32_0 = arith.constant 0 : i32
    %c0_i32_1 = arith.constant 0 : i32
    %c0_i32_2 = arith.constant 0 : i32
    return %c0_i32, %c0_i32_0, %c0_i32_1 : i32, i32, i32
  }
  func.func @transform_9(%arg0: i32) -> (i32, i32, i32) {
    %c0_i32 = arith.constant 0 : i32
    %c0_i32_0 = arith.constant 0 : i32
    %c0_i32_1 = arith.constant 0 : i32
    %c0_i32_2 = arith.constant 0 : i32
    return %c0_i32, %c0_i32_0, %c0_i32_1 : i32, i32, i32
  }
  func.func @transform_10(%arg0: i32) -> (i32, i32, i32) {
    %c0_i32 = arith.constant 0 : i32
    %c0_i32_0 = arith.constant 0 : i32
    %c0_i32_1 = arith.constant 0 : i32
    %c0_i32_2 = arith.constant 0 : i32
    return %c0_i32, %c0_i32_0, %c0_i32_1 : i32, i32, i32
  }
  func.func @transform_11(%arg0: i32) -> (i32, i32, i32) {
    %c0_i32 = arith.constant 0 : i32
    %c0_i32_0 = arith.constant 0 : i32
    %c0_i32_1 = arith.constant 0 : i32
    %c0_i32_2 = arith.constant 0 : i32
    return %c0_i32, %c0_i32_0, %c0_i32_1 : i32, i32, i32
  }
  func.func @transform_12(%arg0: i32) -> (i32, i32, i32) {
    %c0_i32 = arith.constant 0 : i32
    %c0_i32_0 = arith.constant 0 : i32
    %c0_i32_1 = arith.constant 0 : i32
    %c0_i32_2 = arith.constant 0 : i32
    return %c0_i32, %c0_i32_0, %c0_i32_1 : i32, i32, i32
  }
  func.func @transform_13(%arg0: i32) -> (i32, i32, i32) {
    %c0_i32 = arith.constant 0 : i32
    %c0_i32_0 = arith.constant 0 : i32
    %c0_i32_1 = arith.constant 0 : i32
    %c0_i32_2 = arith.constant 0 : i32
    return %c0_i32, %c0_i32_0, %c0_i32_1 : i32, i32, i32
  }
  func.func @transform_14(%arg0: i32) -> (i32, i32) {
    %c0_i32 = arith.constant 0 : i32
    %c0_i32_0 = arith.constant 0 : i32
    %c0_i32_1 = arith.constant 0 : i32
    return %c0_i32, %c0_i32_0 : i32, i32
  }
  func.func @transform_15(%arg0: i32) -> (i32, i32) {
    %c0_i32 = arith.constant 0 : i32
    %c0_i32_0 = arith.constant 0 : i32
    %c0_i32_1 = arith.constant 0 : i32
    return %c0_i32, %c0_i32_0 : i32, i32
  }
  func.func @transform_16(%arg0: i32) -> (i32, i32) {
    %c0_i32 = arith.constant 0 : i32
    %c0_i32_0 = arith.constant 0 : i32
    %c0_i32_1 = arith.constant 0 : i32
    return %c0_i32, %c0_i32_0 : i32, i32
  }
}

</mosaic_0001>

<bundles_post_ra>
// kernel: retnet_forward.1
= control target key start
LH: loop header
LB: loop body
LE: loop exit
PB: predicated region body
PF: predicated region fallthrough
CT: control target
= control target key end

     0   :  { %s3972_s0 = inlined_call_operand.vmem [shape: f32[16,32], index: 0, kind: input, shape index: {}]   ;;  %s3973_s1 = inlined_call_operand.vmem [shape: f32[16,32], index: 1, kind: input, shape index: {}]   ;;  %s3974_s2 = inlined_call_operand.vmem [shape: f32[16,32], index: 2, kind: input, shape index: {}]   ;;  %s3975_s3 = inlined_call_operand.vmem [shape: f32[16,32], index: 3, kind: input, shape index: {}]   ;;  %s3976_s4 = inlined_call_operand.vmem [shape: f32[16,64], index: 4, kind: input, shape index: {}]   ;;  %s3977_s5 = inlined_call_operand.vmem [shape: f32[64,32], index: 5, kind: input, shape index: {}]   ;;  %s3978_s6 = inlined_call_operand.vmem [shape: f32[64,64], index: 6, kind: input, shape index: {}]   ;;  %s3979_s7 = inlined_call_operand.vmem [shape: f32[32,32], index: 7, kind: input, shape index: {}]   ;;  %s3980_s8 = inlined_call_operand.vmem [shape: f32[2,1,32], index: 8, kind: input, shape index: {}]   ;;  %s3981_s9 = inlined_call_operand.vmem [shape: f32[2,32,128], index: 9, kind: input, shape index: {}]   ;;  %s3982_s10 = inlined_call_operand.vmem [shape: f32[2,32,32], index: 10, kind: input, shape index: {}]   ;;  %s3983_s11 = inlined_call_operand.vmem [shape: f32[2,1,32], index: 11, kind: input, shape index: {}]   ;;  %s3984_s12 = inlined_call_operand.vmem [shape: f32[2,32,128], index: 12, kind: input, shape index: {}]   ;;  %s3985_s13 = inlined_call_operand.vmem [shape: f32[2,64,32], index: 13, kind: input, shape index: {}]   ;;  %s3986_s14 = inlined_call_operand.vmem [shape: f32[1,32], index: 14, kind: input, shape index: {}]   ;;  %s3987_s15 = inlined_call_operand.vmem [shape: f32[32,64], index: 15, kind: input, shape index: {}]   ;;  %s3988_s16 = inlined_call_operand.hbm [shape: f32[16,64], index: 16, kind: output, shape index: {}]  }
   0x1   :  { %3990 = sst [smem:[#allocation5_spill]] %s3972_s0 }
   0x2   :  { %s3991_s23 = sld [smem:[#allocation5_spill]]  ;;  %vm86_vm0 = vcmask 261120  }
   0x8   :  { %v3210_v0 = vld [vmem:[%s3991_s23] sm:$0xff]  ;;  %v3215_v1 = vld [vmem:[%s3991_s23 + $0x8] sm:$0xff] }
   0x9   :  { %21 = vsyncpa [#allocation3], 0  ;;  %v84_v2 = vmul.f32 %v3210_v0, %v3210_v0  ;;  %v85_v3 = vmul.f32 %v3215_v1, %v3215_v1  ;;  %v111_v6 = vld [vmem:[%s3981_s9] sm:$0xff]  ;;  %v112_v7 = vld [vmem:[%s3981_s9 + $0x8] sm:$0xff]  ;;  %s3112_s21 = smov 96   ;;  %s3113_s22 = smov 32  }
   0xa   :  { %v113_v8 = vld [vmem:[%s3981_s9 + $0x10] sm:$0xff]  ;;  %v2712_v9 = vpack.c.bf16 %v112_v7, %v111_v6  ;;  %v114_v10 = vld [vmem:[%s3981_s9 + $0x18] sm:$0xff]  ;;  %v2242_v19 = vld [vmem:[%s3980_s8] ss:$0 sm:$0xff]  ;;  %s3114_s25 = smov 31   ;;  %s3115_s28 = smov 1  }
   0xb   :  { %v87_v4 = vsel %vm86_vm0, %v84_v2, 0.0  ;;  %v90_v5 = vsel %vm86_vm0, %v85_v3, 0.0  ;;  %v2716_v11 = vpack.c.bf16 %v114_v10, %v113_v8  ;;  %v61_v28 = vld [vmem:[%s3975_s3 + $0x8] sm:$0xff]  ;;  %v58_v30 = vld [vmem:[%s3974_s2] sm:$0xff]  ;;  %vm198_vm1 = vcmask 1047808   ;;  %v3318_v52 = vld [vmem:[%s3977_s5 + $0x18] sm:$0xff] }
   0xc   :  { %88 = vadd.xlane.f32.xlu0 %v87_v4  ;;  %2713 = vmatprep.subr.bf16.mxu0 %v2712_v9  ;;  %v59_v31 = vld [vmem:[%s3974_s2 + $0x8] sm:$0xff]  ;;  %v60_v37 = vld [vmem:[%s3975_s3] sm:$0xff]  ;;  %v3337_v55 = vld [vmem:[%s3977_s5 + $0x10] sm:$0xff]  ;;  %s3117_s26 = smov 97   ;;  %s3118_s27 = smov 64   ;;  %vm500_vm3 = vcmask 523264  }
   0xd   :  { %2715 = vmatpush3.bf16.msra.mxu0 %v2712_v9  ;;  %v3268_v32 = vld [vmem:[%s3973_s1 + $0x8] sm:$0xff]  ;;  %v3286_v38 = vld [vmem:[%s3973_s1] sm:$0xff]  ;;  %v3346_v56 = vld [vmem:[%s3977_s5 + $0x38] sm:$0xff] }
   0xe   :  { %2717 = vmatprep.subr.bf16.mxu0 %v2716_v11  ;;  %v3309_v50 = vld [vmem:[%s3977_s5 + $0x8] sm:$0xff]  ;;  %v3323_v53 = vld [vmem:[%s3977_s5] sm:$0xff]  ;;  %v3360_v59 = vld [vmem:[%s3977_s5 + $0x30] sm:$0xff] }
   0xf   :  { %v3332_v54 = vld [vmem:[%s3977_s5 + $0x28] sm:$0xff]  ;;  %v3351_v57 = vld [vmem:[%s3977_s5 + $0x20] sm:$0xff]  ;;  %s3116_s5 = smov 127   ;;  %vm3466_vm2 = vmpackc.low %vm86_vm0, %vm86_vm0 }
  0x10   :  { %91 = vadd.xlane.f32.xlu0 %v90_v5 }
  0x11   :  { %2719 = vmatpush3.bf16.msra.mxu0 %v2716_v11 }
  0x99   :  { %v89_v12 = vpop.xlane.xlu0 %88 }
  0x9a   :  { %v94_v13 = vmul.f32 0.03125, %v89_v12 }
  0x9c   :  { %v96_v14 = vadd.f32 1e-06, %v94_v13 }
  0x9d   :  { %v92_v15 = vpop.xlane.xlu0 %91 }
  0x9e   :  { %3018 = vrsqrt.f32 %v96_v14  ;;  %v95_v16 = vmul.f32 0.03125, %v92_v15 }
  0xa0   :  { %v97_v17 = vadd.f32 1e-06, %v95_v16 }
  0xa2   :  { %3020 = vrsqrt.f32 %v97_v17 }
  0xa8   :  { %v3019_v18 = vpop.eup %3018 }
  0xa9   :  { %v100_v20 = vmul.f32 %v3019_v18, %v3210_v0 }
  0xab   :  { %v109_v21 = vmul.f32 %v2242_v19, %v100_v20 }
  0xac   :  { %v3021_v22 = vpop.eup %3020 }
  0xad   :  { %v101_v23 = vmul.f32 %v3021_v22, %v3215_v1  ;;  %2469 = vmatprep.mubr.msk.f32.mxu0 %vm86_vm0, %v109_v21 }
  0xaf   :  { %v110_v24 = vmul.f32 %v2242_v19, %v101_v23 }
  0xb1   :  { %2470 = vmatmul.mubr.msk.f32.vlgmr.msra.gmra.mrb[0].mxu0 %vm86_vm0, %v110_v24 }
 0x184   :  { %v3242_v25 = vpop.f32.mrb[0].mxu0 }
 0x185   :  { %v3244_v26 = vpop.f32.mrb[1].mxu0 }
 0x186   :  { %263 = vrot.lane.b32.xlu1 %v3244_v26, %s3112_s21 }
 0x18a   :  { %265 = vrot.lane.b32.xlu1 %v3242_v25, %s3112_s21 }
 0x1f8   :  { %v264_v27 = vpop.permute.xlu1 %263 }
 0x1f9   :  { %269 = vrot.lane.b32.xlu0 %v264_v27, %s3113_s22 }
 0x1fc   :  { %v266_v29 = vpop.permute.xlu1 %265 }
 0x1fd   :  { %235 = vrot.lane.b32.xlu0 %v61_v28, %s3114_s25  ;;  %272 = vrot.lane.b32.xlu1 %v266_v29, %s3113_s22 }
 0x201   :  { %202 = vrot.lane.b32.xlu0 %v3242_v25, %s3113_s22  ;;  %213 = vrot.lane.b32.xlu1 %v58_v30, %s3115_s28 }
 0x205   :  { %255 = vrot.lane.b32.xlu0 %v3268_v32, %s3113_s22  ;;  %215 = vrot.lane.b32.xlu1 %v59_v31, %s3115_s28 }
 0x26b   :  { %v270_v35 = vpop.permute.xlu0 %269 }
 0x26c   :  { %v271_v36 = vsel %vm198_vm1, %v270_v35, %v264_v27 }
 0x26f   :  { %v273_v33 = vpop.permute.xlu1 %272  ;;  %v3297_v45 = vpop.permute.xlu0 %235 }
 0x270   :  { %v274_v34 = vsel %vm198_vm1, %v273_v33, %v266_v29 }
 0x271   :  { %277 = vrot.lane.b32.xlu1 %v274_v34, %s3113_s22 }
 0x273   :  { %v3290_v39 = vpop.permute.xlu1 %213  ;;  %v203_v58 = vpop.permute.xlu0 %202 }
 0x274   :  { %v204_v60 = vsel %vm198_vm1, %v203_v58, %v3242_v25  ;;  %v74_v58 = vld [vmem:[%s3978_s6 + $0x10] sm:$0xff] }
 0x275   :  { %275 = vrot.lane.b32.xlu1 %v271_v36, %s3113_s22 }
 0x277   :  { %v3292_v40 = vpop.permute.xlu1 %215  ;;  %v3370_v63 = vpop.permute.xlu0 %255 }
 0x278   :  { %v260_v6 = vmul.f32 %v3242_v25, %v3370_v63 }
 0x279   :  { %233 = vrot.lane.b32.xlu1 %v60_v37, %s3114_s25 }
 0x27d   :  { %199 = vrot.lane.b32.xlu1 %v3244_v26, %s3113_s22 }
 0x281   :  { %253 = vrot.lane.b32.xlu1 %v3286_v38, %s3113_s22 }
 0x2e3   :  { %v278_v41 = vpop.permute.xlu1 %277 }
 0x2e4   :  { %v280_v42 = vsel %vm198_vm1, %v278_v41, %v266_v29 }
 0x2e5   :  { %v282_v43 = vmul.f32 %v280_v42, %v3292_v40  ;;  %v294_v47 = vmul.f32 %v280_v42, %v3297_v45 }
 0x2e7   :  { %287 = vrot.lane.b32.xlu0 %v282_v43, %s3114_s25  ;;  %v276_v44 = vpop.permute.xlu1 %275 }
 0x2e8   :  { %v279_v46 = vsel %vm198_vm1, %v276_v44, %v264_v27 }
 0x2e9   :  { %v281_v48 = vmul.f32 %v279_v46, %v3290_v39 }
 0x2eb   :  { %299 = vrot.lane.b32.xlu0 %v294_v47, %s3115_s28  ;;  %285 = vrot.lane.b32.xlu1 %v281_v48, %s3114_s25  ;;  %v3304_v49 = vpop.permute.xlu1 %233  ;;  %v72_v48 = vld [vmem:[%s3978_s6] sm:$0xff] }
 0x2ec   :  { %v293_v51 = vmul.f32 %v279_v46, %v3304_v49 }
 0x2ef   :  { %315 = vrot.lane.b32.xlu0 %v3309_v50, %s3113_s22  ;;  %297 = vrot.lane.b32.xlu1 %v293_v51, %s3115_s28  ;;  %v200_v61 = vpop.permute.xlu1 %199  ;;  %v73_v51 = vld [vmem:[%s3978_s6 + $0x8] sm:$0xff] }
 0x2f0   :  { %v201_v62 = vsel %vm198_vm1, %v200_v61, %v3244_v26  ;;  %v77_v61 = vld [vmem:[%s3978_s6 + $0x28] sm:$0xff] }
 0x2f3   :  { %319 = vrot.lane.b32.xlu0 %v3318_v52, %s3113_s22  ;;  %313 = vrot.lane.b32.xlu1 %v3323_v53, %s3113_s22  ;;  %v3372_v2 = vpop.permute.xlu1 %253 }
 0x2f4   :  { %v259_v7 = vmul.f32 %v3372_v2, %v3244_v26 }
 0x2f7   :  { %323 = vrot.lane.b32.xlu0 %v3332_v54, %s3113_s22  ;;  %317 = vrot.lane.b32.xlu1 %v3337_v55, %s3113_s22 }
 0x2fb   :  { %327 = vrot.lane.b32.xlu0 %v3346_v56, %s3113_s22  ;;  %321 = vrot.lane.b32.xlu1 %v3351_v57, %s3113_s22 }
 0x2ff   :  { %207 = vrot.lane.b32.xlu0 %v204_v60, %s3113_s22  ;;  %325 = vrot.lane.b32.xlu1 %v3360_v59, %s3113_s22  ;;  %v76_v60 = vld [vmem:[%s3978_s6 + $0x20] sm:$0xff] }
 0x303   :  { %205 = vrot.lane.b32.xlu1 %v201_v62, %s3113_s22 }
 0x359   :  { %v288_v3 = vpop.permute.xlu0 %287 }
 0x35a   :  { %v292_v10 = vadd.f32 %v288_v3, %v260_v6 }
 0x35d   :  { %v300_v4 = vpop.permute.xlu0 %299  ;;  %v286_v5 = vpop.permute.xlu1 %285 }
 0x35e   :  { %v291_v11 = vadd.f32 %v286_v5, %v259_v7  ;;  %v304_v12 = vadd.f32 %v300_v4, %v292_v10 }
 0x361   :  { %v3378_v8 = vpop.permute.xlu0 %315  ;;  %v298_v9 = vpop.permute.xlu1 %297 }
 0x362   :  { %v303_v13 = vadd.f32 %v298_v9, %v291_v11  ;;  %v338_v16 = vmul.f32 %v3378_v8, %v304_v12 }
 0x365   :  { %v3380_v14 = vpop.permute.xlu0 %319  ;;  %v3382_v15 = vpop.permute.xlu1 %313 }
 0x366   :  { %v337_v17 = vmul.f32 %v3382_v15, %v303_v13  ;;  %v340_v21 = vmul.f32 %v3380_v14, %v304_v12 }
 0x368   :  { %v2938_v18 = vpack.i.bf16 %v338_v16, %v337_v17  ;;  %v78_v16 = vld [vmem:[%s3978_s6 + $0x30] sm:$0xff]  ;;  %v79_v17 = vld [vmem:[%s3978_s6 + $0x38] sm:$0xff] }
 0x369   :  { %v3386_v19 = vpop.permute.xlu0 %323  ;;  %v3388_v20 = vpop.permute.xlu1 %317 }
 0x36a   :  { %v339_v22 = vmul.f32 %v3388_v20, %v303_v13  ;;  %2939 = vrot.lane.b32.xlu1 %v2938_v18, %s3112_s21  ;;  %v342_v28 = vmul.f32 %v3386_v19, %v304_v12  ;;  %v196_v18 = vmul.f32 %v3244_v26, %v3286_v38 }
 0x36c   :  { %v2943_v23 = vpack.i.bf16 %v340_v21, %v339_v22  ;;  %v3488_v22 = vpack.c.bf16 %v79_v17, %v78_v16 }
 0x36d   :  { %v3393_v24 = vpop.permute.xlu0 %327  ;;  %v3395_v27 = vpop.permute.xlu1 %321 }
 0x36e   :  { %v341_v29 = vmul.f32 %v3395_v27, %v303_v13  ;;  %2944 = vrot.lane.b32.xlu0 %v2943_v23, %s3112_s21  ;;  %v344_v33 = vmul.f32 %v3393_v24, %v304_v12 }
 0x370   :  { %v2948_v30 = vpack.i.bf16 %v342_v28, %v341_v29 }
 0x371   :  { %v3400_v31 = vpop.permute.xlu1 %325  ;;  %v208_v34 = vpop.permute.xlu0 %207 }
 0x372   :  { %v343_v35 = vmul.f32 %v3400_v31, %v303_v13  ;;  %2949 = vrot.lane.b32.xlu1 %v2948_v30, %s3112_s21  ;;  %v210_v37 = vsel %vm198_vm1, %v208_v34, %v3242_v25 }
 0x373   :  { %v220_v44 = vmul.f32 %v3292_v40, %v210_v37  ;;  %v240_v47 = vmul.f32 %v3297_v45, %v210_v37 }
 0x374   :  { %v2953_v36 = vpack.i.bf16 %v344_v33, %v343_v35 }
 0x375   :  { %v206_v41 = vpop.permute.xlu1 %205 }
 0x376   :  { %v209_v42 = vsel %vm198_vm1, %v206_v41, %v3244_v26  ;;  %2954 = vrot.lane.b32.xlu0 %v2953_v36, %s3112_s21 }
 0x377   :  { %v219_v43 = vmul.f32 %v3290_v39, %v209_v42  ;;  %v239_v46 = vmul.f32 %v3304_v49, %v209_v42 }
 0x379   :  { %223 = vrot.lane.b32.xlu1 %v219_v43, %s3116_s5 }
 0x37a   :  { %225 = vrot.lane.b32.xlu0 %v220_v44, %s3116_s5 }
 0x37d   :  { %243 = vrot.lane.b32.xlu1 %v239_v46, %s3117_s26 }
 0x37e   :  { %245 = vrot.lane.b32.xlu0 %v240_v47, %s3117_s26 }
 0x381   :  { %345 = vrot.lane.b32.xlu1 %v3323_v53, %s3118_s27  ;;  %v3435_v53 = vpack.c.bf16 %v73_v51, %v72_v48  ;;  %v197_v48 = vmul.f32 %v3242_v25, %v3268_v32 }
 0x382   :  { %347 = vrot.lane.b32.xlu0 %v3309_v50, %s3118_s27  ;;  %v75_v50 = vld [vmem:[%s3978_s6 + $0x18] sm:$0xff] }
 0x383   :  { %2745 = vmatprep.subr.bf16.mxu0 %v3435_v53 }
 0x384   :  { %2747 = vmatpush3.bf16.msra.mxu0 %v3435_v53 }
 0x385   :  { %349 = vrot.lane.b32.xlu1 %v3337_v55, %s3118_s27  ;;  %v3440_v55 = vpack.c.bf16 %v75_v50, %v74_v58 }
 0x386   :  { %351 = vrot.lane.b32.xlu0 %v3318_v52, %s3118_s27  ;;  %v3455_v52 = vpack.c.bf16 %v77_v61, %v76_v60 }
 0x387   :  { %2749 = vmatprep.subr.bf16.mxu0 %v3440_v55 }
 0x388   :  { %2751 = vmatpush3.bf16.msra.mxu0 %v3440_v55 }
 0x389   :  { %353 = vrot.lane.b32.xlu1 %v3351_v57, %s3118_s27  ;;  %2753 = vmatprep.subr.bf16.mxu0 %v3455_v52 }
 0x38a   :  { %355 = vrot.lane.b32.xlu0 %v3332_v54, %s3118_s27 }
 0x38c   :  { %2755 = vmatpush3.bf16.msra.mxu0 %v3455_v52 }
 0x38d   :  { %357 = vrot.lane.b32.xlu1 %v3360_v59, %s3118_s27  ;;  %2757 = vmatprep.subr.bf16.mxu0 %v3488_v22 }
 0x38e   :  { %359 = vrot.lane.b32.xlu0 %v3346_v56, %s3118_s27 }
 0x390   :  { %2759 = vmatpush3.bf16.msra.mxu0 %v3488_v22 }
 0x3dc   :  { %v2940_v57 = vpop.permute.xlu1 %2939 }
 0x3dd   :  { %v2942_v62 = vunpack.i.h.bf16 %v2940_v57  ;;  %v2941_v3 = vunpack.i.l.bf16 %v2940_v57 }
 0x3df   :  { %v2720_v4 = vpack.c.bf16 %v2942_v62, %v2941_v3 }
 0x3e0   :  { %v2945_v59 = vpop.permute.xlu0 %2944 }
 0x3e1   :  { %v2947_v5 = vunpack.i.h.bf16 %v2945_v59  ;;  %v2946_v6 = vunpack.i.l.bf16 %v2945_v59  ;;  %2722 = vmatprep.subr.msk.bf16.mxu1 %vm3466_vm2, %v2720_v4 }
 0x3e2   :  { %2725 = vmatpush3.bf16.xpose.msk.msra.mxu1 %vm3466_vm2, %v2720_v4 }
 0x3e3   :  { %v2726_v56 = vpack.c.bf16 %v2947_v5, %v2946_v6 }
 0x3e4   :  { %v2950_v7 = vpop.permute.xlu1 %2949 }
 0x3e5   :  { %v2952_v9 = vunpack.i.h.bf16 %v2950_v7  ;;  %v2951_v10 = vunpack.i.l.bf16 %v2950_v7  ;;  %2728 = vmatprep.subr.msk.bf16.mxu1 %vm3466_vm2, %v2726_v56 }
 0x3e7   :  { %v2732_v12 = vpack.c.bf16 %v2952_v9, %v2951_v10 }
 0x3e8   :  { %v2955_v11 = vpop.permute.xlu0 %2954 }
 0x3e9   :  { %v2957_v23 = vunpack.i.h.bf16 %v2955_v11  ;;  %v2956_v28 = vunpack.i.l.bf16 %v2955_v11 }
 0x3ea   :  { %2731 = vmatpush3.bf16.xpose.msk.msra.mxu1 %vm3466_vm2, %v2726_v56 }
 0x3eb   :  { %v224_v13 = vpop.permute.xlu1 %223  ;;  %2734 = vmatprep.subr.msk.bf16.mxu1 %vm3466_vm2, %v2732_v12  ;;  %v2738_v35 = vpack.c.bf16 %v2957_v23, %v2956_v28 }
 0x3ec   :  { %v226_v21 = vpop.permute.xlu0 %225  ;;  %v229_v29 = vadd.f32 %v224_v13, %v196_v18  ;;  %v3546_v13 = vld [vmem:[%s3976_s4 + $0x8] sm:$0xff] }
 0x3ed   :  { %v230_v61 = vadd.f32 %v226_v21, %v197_v48  ;;  %v81_v48 = vld [vmem:[%s3979_s7 + $0x8] sm:$0xff] }
 0x3ef   :  { %v244_v30 = vpop.permute.xlu1 %243 }
 0x3f0   :  { %v249_v33 = vadd.f32 %v244_v30, %v229_v29  ;;  %v246_v34 = vpop.permute.xlu0 %245 }
 0x3f1   :  { %v250_v62 = vadd.f32 %v246_v34, %v230_v61 }
 0x3f2   :  { %2737 = vmatpush3.bf16.xpose.msk.msra.mxu1 %vm3466_vm2, %v2732_v12  ;;  %2488 = vmatprep.mubr.msk.f32.mxu1 %vm86_vm0, %v249_v33  ;;  %v3541_v12 = vld [vmem:[%s3976_s4] sm:$0xff] }
 0x3f3   :  { %v3495_v38 = vpop.permute.xlu1 %345  ;;  %2740 = vmatprep.subr.msk.bf16.mxu1 %vm3466_vm2, %v2738_v35 }
 0x3f4   :  { %v369_v36 = vmul.f32 %v3495_v38, %v3244_v26  ;;  %v3501_v37 = vpop.permute.xlu0 %347 }
 0x3f5   :  { %v370_v41 = vmul.f32 %v3242_v25, %v3501_v37 }
 0x3f7   :  { %v2958_v42 = vpack.i.bf16 %v370_v41, %v369_v36  ;;  %v3505_v43 = vpop.permute.xlu1 %349 }
 0x3f8   :  { %v371_v44 = vmul.f32 %v3505_v43, %v3244_v26  ;;  %v3509_v46 = vpop.permute.xlu0 %351 }
 0x3f9   :  { %v372_v47 = vmul.f32 %v3242_v25, %v3509_v46  ;;  %2959 = vrot.lane.b32.xlu1 %v2958_v42, %s3118_s27 }
 0x3fa   :  { %2743 = vmatpush3.bf16.xpose.msk.msra.mxu1 %vm3466_vm2, %v2738_v35 }
 0x3fb   :  { %v2963_v51 = vpack.i.bf16 %v372_v47, %v371_v44  ;;  %v3518_v58 = vpop.permute.xlu1 %353  ;;  %v80_v47 = vld [vmem:[%s3979_s7] sm:$0xff] }
 0x3fc   :  { %v373_v50 = vmul.f32 %v3518_v58, %v3244_v26  ;;  %v3522_v60 = vpop.permute.xlu0 %355 }
 0x3fd   :  { %v374_v57 = vmul.f32 %v3242_v25, %v3522_v60  ;;  %2964 = vrot.lane.b32.xlu0 %v2963_v51, %s3118_s27  ;;  %v3558_v51 = vpack.c.bf16 %v81_v48, %v80_v47 }
 0x3ff   :  { %v2968_v3 = vpack.i.bf16 %v374_v57, %v373_v50  ;;  %v3527_v4 = vpop.permute.xlu1 %357  ;;  %2777 = vmatprep.subr.bf16.mxu1 %v3558_v51 }
 0x400   :  { %v375_v32 = vmul.f32 %v3527_v4, %v3244_v26  ;;  %v3531_v59 = vpop.permute.xlu0 %359 }
 0x401   :  { %v376_v5 = vmul.f32 %v3242_v25, %v3531_v59  ;;  %2969 = vrot.lane.b32.xlu1 %v2968_v3, %s3118_s27  ;;  %2489 = vmatmul.mubr.msk.f32.vlgmr.msra.gmra.mrb[0].mxu1 %vm86_vm0, %v250_v62 }
 0x402   :  { %2779 = vmatpush3.bf16.msra.mxu1 %v3558_v51 }
 0x403   :  { %v2973_v6 = vpack.i.bf16 %v376_v5, %v375_v32 }
 0x405   :  { %2974 = vrot.lane.b32.xlu0 %v2973_v6, %s3118_s27 }
 0x46b   :  { %v2960_v56 = vpop.permute.xlu1 %2959 }
 0x46c   :  { %v2962_v7 = vunpack.i.h.bf16 %v2960_v56  ;;  %v2961_v9 = vunpack.i.l.bf16 %v2960_v56 }
 0x46e   :  { %v2760_v10 = vpack.c.bf16 %v2962_v7, %v2961_v9  ;;  %v82_v9 = vld [vmem:[%s3979_s7 + $0x10] sm:$0xff] }
 0x46f   :  { %v2965_v11 = vpop.permute.xlu0 %2964 }
 0x470   :  { %2761 = vmatprep.subr.bf16.mxu0 %v2760_v10  ;;  %v2967_v17 = vunpack.i.h.bf16 %v2965_v11  ;;  %v2966_v18 = vunpack.i.l.bf16 %v2965_v11 }
 0x472   :  { %v2764_v30 = vpack.c.bf16 %v2967_v17, %v2966_v18 }
 0x473   :  { %v2970_v23 = vpop.permute.xlu1 %2969 }
 0x474   :  { %v2972_v33 = vunpack.i.h.bf16 %v2970_v23  ;;  %v2971_v34 = vunpack.i.l.bf16 %v2970_v23 }
 0x476   :  { %v2768_v36 = vpack.c.bf16 %v2972_v33, %v2971_v34 }
 0x477   :  { %v2975_v35 = vpop.permute.xlu0 %2974 }
 0x478   :  { %v2977_v41 = vunpack.i.h.bf16 %v2975_v35  ;;  %v2976_v42 = vunpack.i.l.bf16 %v2975_v35  ;;  %v818_v35 = vld [vmem:[%s3982_s10] sm:$0xff] }
 0x47a   :  { %v2772_v44 = vpack.c.bf16 %v2977_v41, %v2976_v42  ;;  %v820_v41 = vld [vmem:[%s3982_s10 + $0x10] sm:$0xff] }
 0x4d4   :  { %v2490_v16 = vpop.f32.mrb[0].mxu1 }
 0x4d5   :  { %v489_v21 = vpop.f32.mrb[1].mxu1  ;;  %v499_v29 = vmul.f32 %v2490_v16, %v3546_v13 }
 0x4d6   :  { %v498_v28 = vmul.f32 %v489_v21, %v3541_v12 }
 0x4d8   :  { %2507 = vmatprep.mubr.msk.f32.mxu0 %vm500_vm3, %v498_v28 }
 0x4d9   :  { %2508 = vmatmul.mubr.msk.f32.vlgmr.msra.gmra.mrb[2].mxu0 %vm500_vm3, %v499_v29 }
 0x4da   :  { %2763 = vmatpush3.bf16.msra.mxu0 %v2760_v10  ;;  %v83_v10 = vld [vmem:[%s3979_s7 + $0x18] sm:$0xff] }
 0x4db   :  { %2765 = vmatprep.subr.bf16.mxu0 %v2764_v30  ;;  %v3570_v11 = vpack.c.bf16 %v83_v10, %v82_v9 }
 0x4dd   :  { %2781 = vmatprep.subr.bf16.mxu1 %v3570_v11 }
 0x4de   :  { %2767 = vmatpush3.bf16.msra.mxu0 %v2764_v30  ;;  %2783 = vmatpush3.bf16.msra.mxu1 %v3570_v11 }
 0x4df   :  { %2769 = vmatprep.subr.bf16.mxu0 %v2768_v36 }
 0x4e2   :  { %2771 = vmatpush3.bf16.msra.mxu0 %v2768_v36  ;;  %v819_v36 = vld [vmem:[%s3982_s10 + $0x8] sm:$0xff] }
 0x4e3   :  { %2773 = vmatprep.subr.bf16.mxu0 %v2772_v44  ;;  %v2784_v42 = vpack.c.bf16 %v819_v36, %v818_v35 }
 0x4e6   :  { %2775 = vmatpush3.bf16.msra.mxu0 %v2772_v44  ;;  %v821_v44 = vld [vmem:[%s3982_s10 + $0x18] sm:$0xff] }
 0x4e7   :  { %v2788_v47 = vpack.c.bf16 %v821_v44, %v820_v41  ;;  %2785 = vmatprep.subr.bf16.mxu0 %v2784_v42 }
 0x5ac   :  { %v2509_v50 = vpop.f32.mrb[2].mxu0 }
 0x5ad   :  { %v583_v61 = vand.u32 2147483647, %v2509_v50  ;;  %v573_v57 = vpop.f32.mrb[3].mxu0 }
 0x5ae   :  { %v582_v62 = vand.u32 2147483647, %v573_v57 }
 0x5af   :  { %v585_v3 = vmax.f32 %v583_v61, 1.0 }
 0x5b0   :  { %v584_v32 = vmax.f32 %v582_v62, 1.0  ;;  %v2262_v62 = vmul.f32 -1.442695, %v3242_v25 }
 0x5b1   :  { %3022 = vrcp.f32 %v585_v3  ;;  %v2261_v3 = vmul.f32 -1.442695, %v3244_v26 }
 0x5b2   :  { %3024 = vrcp.f32 %v584_v32 }
 0x5bb   :  { %v3023_v5 = vpop.eup %3022 }
 0x5bc   :  { %v3025_v6 = vpop.eup %3024  ;;  %v589_v7 = vmul.f32 %v3023_v5, %v499_v29 }
 0x5bd   :  { %v588_v56 = vmul.f32 %v3025_v6, %v498_v28 }
 0x5bf   :  { %2526 = vmatprep.mubr.msk.f32.mxu0 %vm500_vm3, %v588_v56 }
 0x5c0   :  { %2527 = vmatmul.mubr.msk.f32.vlgmr.msra.gmra.mrb[4].mxu0 %vm500_vm3, %v589_v7 }
 0x5c1   :  { %2787 = vmatpush3.bf16.msra.mxu0 %v2784_v42  ;;  %v936_v42 = vld [vmem:[%s3984_s12 + $0x10] sm:$0xff] }
 0x5c2   :  { %2789 = vmatprep.subr.bf16.mxu0 %v2788_v47 }
 0x5c5   :  { %2791 = vmatpush3.bf16.msra.mxu0 %v2788_v47  ;;  %v937_v47 = vld [vmem:[%s3984_s12 + $0x18] sm:$0xff] }
 0x693   :  { %v2528_v16 = vpop.f32.mrb[4].mxu0 }
 0x694   :  { %v694_v17 = vpop.f32.mrb[5].mxu0  ;;  %v704_v21 = vmul.f32 %v2528_v16, %v2528_v16 }
 0x695   :  { %v703_v18 = vmul.f32 %v694_v17, %v694_v17 }
 0x697   :  { %2537 = vmatprep.mubr.msk.f32.mxu1 %vm86_vm0, %v703_v18 }
 0x698   :  { %2538 = vmatmul.mubr.msk.f32.vlgmr.msra.gmra.mrb[2].mxu1 %vm86_vm0, %v704_v21 }
 0x76b   :  { %v2539_v23 = vpop.f32.mrb[2].mxu1 }
 0x76c   :  { %v787_v28 = vmul.f32 0.125, %v2539_v23  ;;  %v777_v29 = vpop.f32.mrb[3].mxu1 }
 0x76d   :  { %v786_v30 = vmul.f32 0.125, %v777_v29 }
 0x76e   :  { %v789_v33 = vadd.f32 1e-06, %v787_v28 }
 0x76f   :  { %v788_v34 = vadd.f32 1e-06, %v786_v30 }
 0x770   :  { %3026 = vrsqrt.f32 %v789_v33 }
 0x771   :  { %3028 = vrsqrt.f32 %v788_v34 }
 0x772   :  { %3030 = vpow2.f32 %v2262_v62 }
 0x773   :  { %3032 = vpow2.f32 %v2261_v3 }
 0x77a   :  { %v3027_v48 = vpop.eup %3026 }
 0x77b   :  { %v3029_v50 = vpop.eup %3028  ;;  %v793_v61 = vmul.f32 %v3027_v48, %v2528_v16  ;;  %v2796_v48 = vpack.c.bf16 %v937_v47, %v936_v42 }
 0x77c   :  { %v792_v57 = vmul.f32 %v3029_v50, %v694_v17  ;;  %v3031_v32 = vpop.eup %3030 }
 0x77d   :  { %812 = vrot.lane.b32.xlu0 %v793_v61, %s3112_s21  ;;  %v3033_v5 = vpop.eup %3032  ;;  %v801_v6 = vadd.f32 1.0, %v3031_v32 }
 0x77e   :  { %810 = vrot.lane.b32.xlu1 %v792_v57, %s3112_s21  ;;  %v800_v56 = vadd.f32 1.0, %v3033_v5 }
 0x77f   :  { %3034 = vrcp.f32 %v801_v6 }
 0x780   :  { %3036 = vrcp.f32 %v800_v56 }
 0x789   :  { %v3035_v7 = vpop.eup %3034 }
 0x78a   :  { %v3037_v9 = vpop.eup %3036  ;;  %v807_v10 = vmul.f32 %v3035_v7, %v3242_v25  ;;  %v2265_v7 = vld [vmem:[%s3983_s11] ss:$0 sm:$0xff] }
 0x78b   :  { %v806_v17 = vmul.f32 %v3037_v9, %v3244_v26 }
 0x7ef   :  { %v813_v16 = vpop.permute.xlu0 %812 }
 0x7f0   :  { %v817_v18 = vmul.f32 %v813_v16, %v807_v10  ;;  %v811_v21 = vpop.permute.xlu1 %810 }
 0x7f1   :  { %v816_v23 = vmul.f32 %v811_v21, %v806_v17  ;;  %v1043_v17 = vld [vmem:[%s3985_s13] sm:$0xff]  ;;  %v1045_v21 = vld [vmem:[%s3985_s13 + $0x10] sm:$0xff] }
 0x7f2   :  { %826 = vrot.lane.b32.xlu0 %v817_v18, %s3113_s22  ;;  %v1044_v18 = vld [vmem:[%s3985_s13 + $0x8] sm:$0xff] }
 0x7f3   :  { %824 = vrot.lane.b32.xlu1 %v816_v23, %s3113_s22  ;;  %v2800_v23 = vpack.c.bf16 %v1044_v18, %v1043_v17 }
 0x7f5   :  { %2801 = vmatprep.subr.bf16.mxu0 %v2800_v23 }
 0x864   :  { %v827_v29 = vpop.permute.xlu0 %826 }
 0x865   :  { %v825_v28 = vpop.permute.xlu1 %824 }
 0x866   :  { %2548 = vmatprep.mubr.msk.f32.mxu0 %vm86_vm0, %v825_v28  ;;  %v1046_v28 = vld [vmem:[%s3985_s13 + $0x18] sm:$0xff] }
 0x867   :  { %2549 = vmatmul.mubr.msk.f32.vlgmr.msra.gmra.mrb[6].mxu0 %vm86_vm0, %v827_v29  ;;  %v2804_v29 = vpack.c.bf16 %v1046_v28, %v1045_v21 }
 0x868   :  { %2803 = vmatpush3.bf16.msra.mxu0 %v2800_v23 }
 0x869   :  { %2805 = vmatprep.subr.bf16.mxu0 %v2804_v29 }
 0x86c   :  { %2807 = vmatpush3.bf16.msra.mxu0 %v2804_v29  ;;  %v2277_v29 = vld [vmem:[%s3981_s9 + $0x38] sm:$0xff] }
 0x93a   :  { %v2550_v30 = vpop.f32.mrb[6].mxu0 }
 0x93b   :  { %v3599_v33 = vadd.f32 %v2550_v30, %v3215_v1  ;;  %v898_v25 = vpop.f32.mrb[7].mxu0  ;;  %v934_v1 = vld [vmem:[%s3984_s12] sm:$0xff] }
 0x93c   :  { %v3602_v26 = vadd.f32 %v898_v25, %v3210_v0  ;;  %v935_v0 = vld [vmem:[%s3984_s12 + $0x8] sm:$0xff]  ;;  %v1047_v30 = vld [vmem:[%s3985_s13 + $0x20] sm:$0xff] }
 0x93d   :  { %v910_v34 = vmul.f32 %v3599_v33, %v3599_v33  ;;  %v2792_v44 = vpack.c.bf16 %v935_v0, %v934_v1  ;;  %v1048_v25 = vld [vmem:[%s3985_s13 + $0x28] sm:$0xff] }
 0x93e   :  { %v909_v35 = vmul.f32 %v3602_v26, %v3602_v26 }
 0x93f   :  { %v914_v36 = vsel %vm86_vm0, %v910_v34, 0.0  ;;  %2793 = vmatprep.subr.bf16.mxu1 %v2792_v44  ;;  %v2808_v34 = vpack.c.bf16 %v1048_v25, %v1047_v30 }
 0x940   :  { %915 = vadd.xlane.f32.xlu0 %v914_v36  ;;  %v911_v41 = vsel %vm86_vm0, %v909_v35, 0.0  ;;  %2795 = vmatpush3.bf16.msra.mxu1 %v2792_v44  ;;  %v1049_v35 = vld [vmem:[%s3985_s13 + $0x30] sm:$0xff]  ;;  %v1050_v36 = vld [vmem:[%s3985_s13 + $0x38] sm:$0xff] }
 0x941   :  { %912 = vadd.xlane.f32.xlu1 %v911_v41  ;;  %2797 = vmatprep.subr.bf16.mxu1 %v2796_v48  ;;  %v2812_v1 = vpack.c.bf16 %v1050_v36, %v1049_v35 }
 0x942   :  { %2809 = vmatprep.subr.bf16.mxu0 %v2808_v34 }
 0x943   :  { %2811 = vmatpush3.bf16.msra.mxu0 %v2808_v34 }
 0x944   :  { %2799 = vmatpush3.bf16.msra.mxu1 %v2796_v48  ;;  %2813 = vmatprep.subr.bf16.mxu0 %v2812_v1 }
 0x947   :  { %2815 = vmatpush3.bf16.msra.mxu0 %v2812_v1 }
 0x948   :  { %2849 = vmatprep.subr.bf16.mxu0 %v3435_v53 }
 0x9cd   :  { %v916_v50 = vpop.xlane.xlu0 %915 }
 0x9ce   :  { %v918_v61 = vmul.f32 0.03125, %v916_v50  ;;  %v913_v57 = vpop.xlane.xlu1 %912 }
 0x9cf   :  { %v917_v62 = vmul.f32 0.03125, %v913_v57 }
 0x9d0   :  { %v920_v3 = vadd.f32 1e-06, %v918_v61 }
 0x9d1   :  { %v919_v32 = vadd.f32 1e-06, %v917_v62 }
 0x9d2   :  { %3038 = vrsqrt.f32 %v920_v3 }
 0x9d3   :  { %3040 = vrsqrt.f32 %v919_v32 }
 0x9dc   :  { %v3039_v5 = vpop.eup %3038 }
 0x9dd   :  { %v3041_v6 = vpop.eup %3040  ;;  %v924_v56 = vmul.f32 %v3039_v5, %v3599_v33 }
 0x9de   :  { %v923_v9 = vmul.f32 %v3041_v6, %v3602_v26 }
 0x9df   :  { %v933_v16 = vmul.f32 %v2265_v7, %v924_v56 }
 0x9e0   :  { %v932_v10 = vmul.f32 %v2265_v7, %v923_v9 }
 0x9e2   :  { %2559 = vmatprep.mubr.msk.f32.mxu1 %vm86_vm0, %v932_v10 }
 0x9e3   :  { %2560 = vmatmul.mubr.msk.f32.vlgmr.msra.gmra.mrb[4].mxu1 %vm86_vm0, %v933_v16 }
 0xab6   :  { %v2561_v41 = vpop.f32.mrb[4].mxu1 }
 0xab7   :  { %1037 = vrot.lane.b32.xlu1 %v2561_v41, %s3118_s27  ;;  %v1010_v0 = vpop.f32.mrb[5].mxu1  ;;  %v2269_v42 = vmul.f32 -1.442695, %v2561_v41 }
 0xab8   :  { %1035 = vrot.lane.b32.xlu0 %v1010_v0, %s3118_s27  ;;  %v2268_v44 = vmul.f32 -1.442695, %v1010_v0 }
 0xab9   :  { %3042 = vpow2.f32 %v2269_v42 }
 0xaba   :  { %3044 = vpow2.f32 %v2268_v44 }
 0xac3   :  { %v3043_v47 = vpop.eup %3042 }
 0xac4   :  { %v3045_v48 = vpop.eup %3044  ;;  %v1026_v50 = vadd.f32 1.0, %v3043_v47  ;;  %v2273_v47 = vld [vmem:[%s3980_s8 + $0x1] ss:$0 sm:$0xff] }
 0xac5   :  { %v1025_v61 = vadd.f32 1.0, %v3045_v48 }
 0xac6   :  { %3046 = vrcp.f32 %v1026_v50 }
 0xac7   :  { %3048 = vrcp.f32 %v1025_v61 }
 0xad0   :  { %v3047_v57 = vpop.eup %3046 }
 0xad1   :  { %v3049_v62 = vpop.eup %3048  ;;  %v1032_v3 = vmul.f32 %v3047_v57, %v2561_v41 }
 0xad2   :  { %v1031_v5 = vmul.f32 %v3049_v62, %v1010_v0 }
 0xb29   :  { %v1038_v32 = vpop.permute.xlu1 %1037 }
 0xb2a   :  { %v1042_v6 = vmul.f32 %v1038_v32, %v1032_v3  ;;  %v1036_v56 = vpop.permute.xlu0 %1035 }
 0xb2b   :  { %v1041_v7 = vmul.f32 %v1036_v56, %v1031_v5 }
 0xb2c   :  { %1055 = vrot.lane.b32.xlu0 %v1042_v6, %s3118_s27 }
 0xb2d   :  { %1053 = vrot.lane.b32.xlu1 %v1041_v7, %s3118_s27 }
 0xb9e   :  { %v1056_v10 = vpop.permute.xlu0 %1055 }
 0xb9f   :  { %v1054_v9 = vpop.permute.xlu1 %1053 }
 0xba0   :  { %2578 = vmatprep.mubr.msk.f32.mxu0 %vm500_vm3, %v1054_v9 }
 0xba1   :  { %2579 = vmatmul.mubr.msk.f32.vlgmr.msra.gmra.mrb[8].mxu0 %vm500_vm3, %v1056_v10 }
 0xba2   :  { %2851 = vmatpush3.bf16.msra.mxu0 %v3435_v53 }
 0xba3   :  { %2853 = vmatprep.subr.bf16.mxu0 %v3440_v55 }
 0xba6   :  { %2855 = vmatpush3.bf16.msra.mxu0 %v3440_v55 }
 0xba7   :  { %2857 = vmatprep.subr.bf16.mxu0 %v3455_v52 }
 0xbaa   :  { %2859 = vmatpush3.bf16.msra.mxu0 %v3455_v52 }
 0xbab   :  { %2861 = vmatprep.subr.bf16.mxu0 %v3488_v22 }
 0xbae   :  { %2863 = vmatpush3.bf16.msra.mxu0 %v3488_v22  ;;  %v2274_v22 = vld [vmem:[%s3981_s9 + $0x20] sm:$0xff] }
 0xc74   :  { %v2580_v16 = vpop.f32.mrb[8].mxu0 }
 0xc75   :  { %v3668_v17 = vadd.f32 %v2580_v16, %v3599_v33  ;;  %v1127_v18 = vpop.f32.mrb[9].mxu0  ;;  %v2275_v33 = vld [vmem:[%s3981_s9 + $0x28] sm:$0xff] }
 0xc76   :  { %v3671_v21 = vadd.f32 %v1127_v18, %v3602_v26  ;;  %v2276_v26 = vld [vmem:[%s3981_s9 + $0x30] sm:$0xff]  ;;  %v2816_v28 = vpack.c.bf16 %v2275_v33, %v2274_v22 }
 0xc77   :  { %v1139_v53 = vmul.f32 %v3668_v17, %v3668_v17  ;;  %v2820_v30 = vpack.c.bf16 %v2277_v29, %v2276_v26 }
 0xc78   :  { %v1138_v55 = vmul.f32 %v3671_v21, %v3671_v21  ;;  %2817 = vmatprep.subr.bf16.mxu1 %v2816_v28 }
 0xc79   :  { %v1143_v52 = vsel %vm86_vm0, %v1139_v53, 0.0  ;;  %2819 = vmatpush3.bf16.msra.mxu1 %v2816_v28 }
 0xc7a   :  { %1144 = vadd.xlane.f32.xlu0 %v1143_v52  ;;  %v1140_v23 = vsel %vm86_vm0, %v1138_v55, 0.0  ;;  %2821 = vmatprep.subr.bf16.mxu1 %v2820_v30 }
 0xc7b   :  { %1141 = vadd.xlane.f32.xlu1 %v1140_v23 }
 0xc7d   :  { %2823 = vmatpush3.bf16.msra.mxu1 %v2820_v30 }
 0xd07   :  { %v1145_v25 = vpop.xlane.xlu0 %1144 }
 0xd08   :  { %v1147_v34 = vmul.f32 0.03125, %v1145_v25  ;;  %v1142_v35 = vpop.xlane.xlu1 %1141 }
 0xd09   :  { %v1146_v36 = vmul.f32 0.03125, %v1142_v35 }
 0xd0a   :  { %v1149_v41 = vadd.f32 1e-06, %v1147_v34 }
 0xd0b   :  { %v1148_v1 = vadd.f32 1e-06, %v1146_v36 }
 0xd0c   :  { %3050 = vrsqrt.f32 %v1149_v41 }
 0xd0d   :  { %3052 = vrsqrt.f32 %v1148_v1 }
 0xd16   :  { %v3051_v0 = vpop.eup %3050 }
 0xd17   :  { %v3053_v42 = vpop.eup %3052  ;;  %v1153_v44 = vmul.f32 %v3051_v0, %v3668_v17 }
 0xd18   :  { %v1152_v48 = vmul.f32 %v3053_v42, %v3671_v21 }
 0xd19   :  { %v1163_v61 = vmul.f32 %v2273_v47, %v1153_v44 }
 0xd1a   :  { %v1162_v50 = vmul.f32 %v2273_v47, %v1152_v48 }
 0xd1c   :  { %2589 = vmatprep.mubr.msk.f32.mxu1 %vm86_vm0, %v1162_v50 }
 0xd1d   :  { %2590 = vmatmul.mubr.msk.f32.vlgmr.msra.gmra.mrb[6].mxu1 %vm86_vm0, %v1163_v61 }
 0xdf0   :  { %v3698_v57 = vpop.f32.mrb[6].mxu1 }
 0xdf1   :  { %1294 = vrot.lane.b32.xlu1 %v3698_v57, %s3112_s21  ;;  %v3702_v62 = vpop.f32.mrb[7].mxu1  ;;  %v3706_v3 = vmul.f32 %v3698_v57, %v3509_v46  ;;  %v3710_v32 = vmul.f32 %v3698_v57, %v3501_v37  ;;  %v3714_v5 = vmul.f32 %v3698_v57, %v3531_v59  ;;  %v3736_v59 = vmul.f32 %v3698_v57, %v3522_v60 }
 0xdf2   :  { %1292 = vrot.lane.b32.xlu0 %v3702_v62, %s3112_s21  ;;  %v3720_v6 = vmul.f32 %v3702_v62, %v3505_v43  ;;  %v3724_v56 = vmul.f32 %v3702_v62, %v3495_v38  ;;  %v3728_v46 = vmul.f32 %v3702_v62, %v3527_v4  ;;  %v3732_v37 = vmul.f32 %v3702_v62, %v3518_v58 }
 0xdf3   :  { %v1289_v36 = vmul.f32 %v3698_v57, %v3370_v63  ;;  %v1288_v1 = vmul.f32 %v3702_v62, %v3372_v2 }
 0xdf4   :  { %v3003_v43 = vpack.i.bf16 %v3706_v3, %v3720_v6  ;;  %v2998_v7 = vpack.i.bf16 %v3710_v32, %v3724_v56  ;;  %v3013_v38 = vpack.i.bf16 %v3714_v5, %v3728_v46  ;;  %v3008_v4 = vpack.i.bf16 %v3736_v59, %v3732_v37  ;;  %v3086_v37 = vld [vmem:[%s3973_s1] sm:$0xff] }
 0xdf5   :  { %v1250_v59 = vmul.f32 %v3086_v37, %v3702_v62  ;;  %v2301_v37 = vld [vmem:[%s3982_s10 + $0x38] sm:$0xff] }
 0xe63   :  { %v1295_v9 = vpop.permute.xlu1 %1294 }
 0xe64   :  { %1301 = vrot.lane.b32.xlu0 %v1295_v9, %s3113_s22  ;;  %v1293_v58 = vpop.permute.xlu0 %1292 }
 0xe65   :  { %1298 = vrot.lane.b32.xlu1 %v1293_v58, %s3113_s22 }
 0xed6   :  { %v1302_v60 = vpop.permute.xlu0 %1301 }
 0xed7   :  { %v1299_v10 = vpop.permute.xlu1 %1298  ;;  %v1303_v16 = vsel %vm198_vm1, %v1302_v60, %v1295_v9 }
 0xed8   :  { %1306 = vrot.lane.b32.xlu0 %v1303_v16, %s3113_s22  ;;  %v1300_v18 = vsel %vm198_vm1, %v1299_v10, %v1293_v58 }
 0xed9   :  { %1304 = vrot.lane.b32.xlu1 %v1300_v18, %s3113_s22 }
 0xedc   :  { %1255 = vrot.lane.b32.xlu0 %v3698_v57, %s3113_s22 }
 0xedd   :  { %1252 = vrot.lane.b32.xlu1 %v3702_v62, %s3113_s22 }
 0xf4a   :  { %v1307_v53 = vpop.permute.xlu0 %1306 }
 0xf4b   :  { %v1309_v55 = vsel %vm198_vm1, %v1307_v53, %v1295_v9  ;;  %v1305_v52 = vpop.permute.xlu1 %1304 }
 0xf4c   :  { %v1311_v23 = vmul.f32 %v1309_v55, %v3292_v40  ;;  %v1308_v22 = vsel %vm198_vm1, %v1305_v52, %v1293_v58  ;;  %v1323_v26 = vmul.f32 %v1309_v55, %v3297_v45 }
 0xf4d   :  { %v1310_v33 = vmul.f32 %v1308_v22, %v3290_v39  ;;  %v1322_v28 = vmul.f32 %v1308_v22, %v3304_v49 }
 0xf4e   :  { %1316 = vrot.lane.b32.xlu0 %v1311_v23, %s3114_s25  ;;  %v1256_v29 = vpop.permute.xlu0 %1255 }
 0xf4f   :  { %1314 = vrot.lane.b32.xlu1 %v1310_v33, %s3114_s25  ;;  %v1253_v30 = vpop.permute.xlu1 %1252  ;;  %v1257_v25 = vsel %vm198_vm1, %v1256_v29, %v3698_v57 }
 0xf50   :  { %v1254_v34 = vsel %vm198_vm1, %v1253_v30, %v3702_v62 }
 0xf52   :  { %1328 = vrot.lane.b32.xlu0 %v1323_v26, %s3115_s28 }
 0xf53   :  { %1326 = vrot.lane.b32.xlu1 %v1322_v28, %s3115_s28 }
 0xf56   :  { %1260 = vrot.lane.b32.xlu0 %v1257_v25, %s3113_s22 }
 0xf57   :  { %1258 = vrot.lane.b32.xlu1 %v1254_v34, %s3113_s22 }
 0xfc0   :  { %v1317_v35 = vpop.permute.xlu0 %1316 }
 0xfc1   :  { %v1315_v41 = vpop.permute.xlu1 %1314  ;;  %v1321_v0 = vadd.f32 %v1317_v35, %v1289_v36 }
 0xfc2   :  { %v1320_v42 = vadd.f32 %v1315_v41, %v1288_v1  ;;  %v3087_v41 = vld [vmem:[%s3973_s1 + $0x8] sm:$0xff] }
 0xfc3   :  { %v1251_v1 = vmul.f32 %v3087_v41, %v3698_v57 }
 0xfc4   :  { %v1329_v44 = vpop.permute.xlu0 %1328 }
 0xfc5   :  { %v1333_v47 = vadd.f32 %v1329_v44, %v1321_v0  ;;  %v1327_v48 = vpop.permute.xlu1 %1326 }
 0xfc6   :  { %v1332_v50 = vadd.f32 %v1327_v48, %v1320_v42 }
 0xfc7   :  { %v1337_v61 = vmul.f32 %v1333_v47, %v3380_v14  ;;  %v1335_v9 = vmul.f32 %v1333_v47, %v3378_v8  ;;  %v1341_v58 = vmul.f32 %v1333_v47, %v3393_v24  ;;  %v1339_v60 = vmul.f32 %v1333_v47, %v3386_v19 }
 0xfc8   :  { %v1336_v63 = vmul.f32 %v1332_v50, %v3388_v20  ;;  %v1334_v10 = vmul.f32 %v1332_v50, %v3382_v15  ;;  %v1340_v2 = vmul.f32 %v1332_v50, %v3400_v31  ;;  %v1338_v16 = vmul.f32 %v1332_v50, %v3395_v27  ;;  %v1261_v52 = vpop.permute.xlu0 %1260 }
 0xfc9   :  { %v1259_v8 = vpop.permute.xlu1 %1258  ;;  %v1263_v19 = vsel %vm198_vm1, %v1261_v52, %v3698_v57 }
 0xfca   :  { %v2983_v18 = vpack.i.bf16 %v1337_v61, %v1336_v63  ;;  %v2978_v53 = vpack.i.bf16 %v1335_v9, %v1334_v10  ;;  %v2993_v55 = vpack.i.bf16 %v1341_v58, %v1340_v2  ;;  %v2988_v14 = vpack.i.bf16 %v1339_v60, %v1338_v16 }
 0xfcb   :  { %v1262_v15 = vsel %vm198_vm1, %v1259_v8, %v3702_v62  ;;  %v1265_v20 = vmul.f32 %v1263_v19, %v3292_v40  ;;  %v1277_v27 = vmul.f32 %v1263_v19, %v3297_v45 }
 0xfcc   :  { %2984 = vrot.lane.b32.xlu0 %v2983_v18, %s3112_s21  ;;  %2979 = vrot.lane.b32.xlu1 %v2978_v53, %s3112_s21  ;;  %v1264_v24 = vmul.f32 %v1262_v15, %v3290_v39  ;;  %v1276_v31 = vmul.f32 %v1262_v15, %v3304_v49 }
 0xfd0   :  { %2994 = vrot.lane.b32.xlu0 %v2993_v55, %s3112_s21  ;;  %2989 = vrot.lane.b32.xlu1 %v2988_v14, %s3112_s21 }
 0xfd4   :  { %1270 = vrot.lane.b32.xlu0 %v1265_v20, %s3116_s5  ;;  %1268 = vrot.lane.b32.xlu1 %v1264_v24, %s3116_s5 }
 0xfd8   :  { %1282 = vrot.lane.b32.xlu0 %v1277_v27, %s3117_s26  ;;  %1280 = vrot.lane.b32.xlu1 %v1276_v31, %s3117_s26 }
 0xfdc   :  { %3004 = vrot.lane.b32.xlu0 %v3003_v43, %s3118_s27  ;;  %2999 = vrot.lane.b32.xlu1 %v2998_v7, %s3118_s27 }
 0xfe0   :  { %3014 = vrot.lane.b32.xlu0 %v3013_v38, %s3118_s27  ;;  %3009 = vrot.lane.b32.xlu1 %v3008_v4, %s3118_s27 }
0x103e   :  { %v2985_v39 = vpop.permute.xlu0 %2984  ;;  %v2980_v40 = vpop.permute.xlu1 %2979 }
0x103f   :  { %v2987_v45 = vunpack.i.h.bf16 %v2985_v39  ;;  %v2986_v49 = vunpack.i.l.bf16 %v2985_v39  ;;  %v2982_v3 = vunpack.i.h.bf16 %v2980_v40  ;;  %v2981_v6 = vunpack.i.l.bf16 %v2980_v40 }
0x1041   :  { %v2824_v43 = vpack.c.bf16 %v2982_v3, %v2981_v6  ;;  %v2830_v32 = vpack.c.bf16 %v2987_v45, %v2986_v49 }
0x1042   :  { %v2990_v23 = vpop.permute.xlu1 %2989  ;;  %v2995_v33 = vpop.permute.xlu0 %2994 }
0x1043   :  { %2826 = vmatprep.subr.msk.bf16.mxu1 %vm3466_vm2, %v2824_v43  ;;  %v2992_v56 = vunpack.i.h.bf16 %v2990_v23  ;;  %v2991_v46 = vunpack.i.l.bf16 %v2990_v23  ;;  %v2997_v28 = vunpack.i.h.bf16 %v2995_v33  ;;  %v2996_v29 = vunpack.i.l.bf16 %v2995_v33 }
0x1044   :  { %2829 = vmatpush3.bf16.xpose.msk.msra.mxu1 %vm3466_vm2, %v2824_v43  ;;  %v2297_v33 = vmul.f32 -1.442695, %v3698_v57 }
0x1045   :  { %2832 = vmatprep.subr.msk.bf16.mxu1 %vm3466_vm2, %v2830_v32  ;;  %v2836_v4 = vpack.c.bf16 %v2992_v56, %v2991_v46  ;;  %v2842_v35 = vpack.c.bf16 %v2997_v28, %v2996_v29  ;;  %v2300_v56 = vld [vmem:[%s3982_s10 + $0x30] sm:$0xff] }
0x1046   :  { %v1269_v5 = vpop.permute.xlu1 %1268  ;;  %v1271_v36 = vpop.permute.xlu0 %1270 }
0x1047   :  { %v1274_v7 = vadd.f32 %v1269_v5, %v1250_v59  ;;  %v1275_v42 = vadd.f32 %v1271_v36, %v1251_v1  ;;  %v2299_v5 = vld [vmem:[%s3982_s10 + $0x28] sm:$0xff]  ;;  %v2892_v59 = vpack.c.bf16 %v2301_v37, %v2300_v56 }
0x104a   :  { %v1281_v38 = vpop.permute.xlu1 %1280  ;;  %v1283_v0 = vpop.permute.xlu0 %1282 }
0x104b   :  { %v1286_v22 = vadd.f32 %v1281_v38, %v1274_v7  ;;  %v1287_v44 = vadd.f32 %v1283_v0, %v1275_v42 }
0x104c   :  { %2835 = vmatpush3.bf16.xpose.msk.msra.mxu1 %vm3466_vm2, %v2830_v32  ;;  %v2298_v32 = vld [vmem:[%s3982_s10 + $0x20] sm:$0xff] }
0x104d   :  { %2838 = vmatprep.subr.msk.bf16.mxu1 %vm3466_vm2, %v2836_v4  ;;  %2608 = vmatprep.mubr.msk.f32.mxu1 %vm86_vm0, %v1286_v22  ;;  %v2888_v46 = vpack.c.bf16 %v2299_v5, %v2298_v32 }
0x104e   :  { %v3000_v26 = vpop.permute.xlu1 %2999  ;;  %v3005_v54 = vpop.permute.xlu0 %3004 }
0x104f   :  { %v3002_v30 = vunpack.i.h.bf16 %v3000_v26  ;;  %v3001_v25 = vunpack.i.l.bf16 %v3000_v26  ;;  %v3007_v48 = vunpack.i.h.bf16 %v3005_v54  ;;  %v3006_v50 = vunpack.i.l.bf16 %v3005_v54 }
0x1050   :  { %v2296_v26 = vmul.f32 -1.442695, %v3702_v62 }
0x1051   :  { %v2864_v34 = vpack.c.bf16 %v3002_v30, %v3001_v25  ;;  %v2868_v63 = vpack.c.bf16 %v3007_v48, %v3006_v50 }
0x1052   :  { %v3010_v9 = vpop.permute.xlu1 %3009 }
0x1053   :  { %2865 = vmatprep.subr.bf16.mxu0 %v2864_v34  ;;  %v3012_v10 = vunpack.i.h.bf16 %v3010_v9  ;;  %v3011_v2 = vunpack.i.l.bf16 %v3010_v9 }
0x1054   :  { %2841 = vmatpush3.bf16.xpose.msk.msra.mxu1 %vm3466_vm2, %v2836_v4 }
0x1055   :  { %2844 = vmatprep.subr.msk.bf16.mxu1 %vm3466_vm2, %v2842_v35  ;;  %v2872_v18 = vpack.c.bf16 %v3012_v10, %v3011_v2  ;;  %v2309_v2 = vld [vmem:[%s3984_s12 + $0x38] sm:$0xff] }
0x105c   :  { %2847 = vmatpush3.bf16.xpose.msk.msra.mxu1 %vm3466_vm2, %v2842_v35 }
0x105d   :  { %2881 = vmatprep.subr.bf16.mxu1 %v3558_v51 }
0x1063   :  { %2609 = vmatmul.mubr.msk.f32.vlgmr.msra.gmra.mrb[8].mxu1 %vm86_vm0, %v1287_v44 }
0x1064   :  { %2883 = vmatpush3.bf16.msra.mxu1 %v3558_v51  ;;  %v3015_v51 = vpop.permute.xlu0 %3014 }
0x1065   :  { %2885 = vmatprep.subr.bf16.mxu1 %v3570_v11  ;;  %v3016_v16 = vunpack.i.l.bf16 %v3015_v51 }
0x1068   :  { %2887 = vmatpush3.bf16.msra.mxu1 %v3570_v11  ;;  %v3017_v11 = vunpack.i.h.bf16 %v3015_v51 }
0x106a   :  { %v2876_v53 = vpack.c.bf16 %v3017_v11, %v3016_v16 }
0x1136   :  { %v2610_v47 = vpop.f32.mrb[8].mxu1 }
0x1137   :  { %v1462_v61 = vpop.f32.mrb[9].mxu1  ;;  %v1472_v60 = vmul.f32 %v2610_v47, %v3546_v13 }
0x1138   :  { %v1471_v58 = vmul.f32 %v1462_v61, %v3541_v12 }
0x113a   :  { %2627 = vmatprep.mubr.msk.f32.mxu0 %vm500_vm3, %v1471_v58 }
0x113b   :  { %2628 = vmatmul.mubr.msk.f32.vlgmr.msra.gmra.mrb[10].mxu0 %vm500_vm3, %v1472_v60 }
0x113c   :  { %2867 = vmatpush3.bf16.msra.mxu0 %v2864_v34 }
0x113d   :  { %2869 = vmatprep.subr.bf16.mxu0 %v2868_v63 }
0x1140   :  { %2871 = vmatpush3.bf16.msra.mxu0 %v2868_v63  ;;  %v2308_v63 = vld [vmem:[%s3984_s12 + $0x30] sm:$0xff] }
0x1141   :  { %2873 = vmatprep.subr.bf16.mxu0 %v2872_v18  ;;  %v2900_v51 = vpack.c.bf16 %v2309_v2, %v2308_v63 }
0x1144   :  { %2875 = vmatpush3.bf16.msra.mxu0 %v2872_v18 }
0x1145   :  { %2877 = vmatprep.subr.bf16.mxu0 %v2876_v53 }
0x1148   :  { %2879 = vmatpush3.bf16.msra.mxu0 %v2876_v53 }
0x1149   :  { %2889 = vmatprep.subr.bf16.mxu0 %v2888_v46 }
0x120e   :  { %v2629_v12 = vpop.f32.mrb[10].mxu0 }
0x120f   :  { %v1555_v13 = vand.u32 2147483647, %v2629_v12  ;;  %v1545_v55 = vpop.f32.mrb[11].mxu0 }
0x1210   :  { %v1554_v52 = vand.u32 2147483647, %v1545_v55 }
0x1211   :  { %v1557_v14 = vmax.f32 %v1555_v13, 1.0 }
0x1212   :  { %v1556_v8 = vmax.f32 %v1554_v52, 1.0 }
0x1213   :  { %3054 = vrcp.f32 %v1557_v14 }
0x1214   :  { %3056 = vrcp.f32 %v1556_v8  ;;  %v2305_v8 = vld [vmem:[%s3983_s11 + $0x1] ss:$0 sm:$0xff] }
0x121d   :  { %v3055_v19 = vpop.eup %3054 }
0x121e   :  { %v3057_v15 = vpop.eup %3056  ;;  %v1561_v24 = vmul.f32 %v3055_v19, %v1472_v60 }
0x121f   :  { %v1560_v20 = vmul.f32 %v3057_v15, %v1471_v58 }
0x1221   :  { %2646 = vmatprep.mubr.msk.f32.mxu0 %vm500_vm3, %v1560_v20 }
0x1222   :  { %2647 = vmatmul.mubr.msk.f32.vlgmr.msra.gmra.mrb[12].mxu0 %vm500_vm3, %v1561_v24  ;;  %v2314_v24 = vld [vmem:[%s3985_s13 + $0x40] sm:$0xff] }
0x1223   :  { %2891 = vmatpush3.bf16.msra.mxu0 %v2888_v46 }
0x1224   :  { %2893 = vmatprep.subr.bf16.mxu0 %v2892_v59 }
0x1227   :  { %2895 = vmatpush3.bf16.msra.mxu0 %v2892_v59 }
0x12f5   :  { %v2648_v27 = vpop.f32.mrb[12].mxu0 }
0x12f6   :  { %v1666_v31 = vpop.f32.mrb[13].mxu0  ;;  %v1676_v40 = vmul.f32 %v2648_v27, %v2648_v27 }
0x12f7   :  { %v1675_v39 = vmul.f32 %v1666_v31, %v1666_v31 }
0x12f9   :  { %2657 = vmatprep.mubr.msk.f32.mxu1 %vm86_vm0, %v1675_v39 }
0x12fa   :  { %2658 = vmatmul.mubr.msk.f32.vlgmr.msra.gmra.mrb[10].mxu1 %vm86_vm0, %v1676_v40  ;;  %v2317_v40 = vld [vmem:[%s3985_s13 + $0x58] sm:$0xff] }
0x13cd   :  { %v2659_v45 = vpop.f32.mrb[10].mxu1 }
0x13ce   :  { %v1759_v49 = vmul.f32 0.125, %v2659_v45  ;;  %v1749_v3 = vpop.f32.mrb[11].mxu1 }
0x13cf   :  { %v1758_v6 = vmul.f32 0.125, %v1749_v3  ;;  %v2319_v3 = vld [vmem:[%s3985_s13 + $0x68] sm:$0xff] }
0x13d0   :  { %v1761_v43 = vadd.f32 1e-06, %v1759_v49  ;;  %v2318_v49 = vld [vmem:[%s3985_s13 + $0x60] sm:$0xff] }
0x13d1   :  { %v1760_v23 = vadd.f32 1e-06, %v1758_v6  ;;  %v2912_v6 = vpack.c.bf16 %v2319_v3, %v2318_v49 }
0x13d2   :  { %3058 = vrsqrt.f32 %v1761_v43  ;;  %v2320_v43 = vld [vmem:[%s3985_s13 + $0x70] sm:$0xff] }
0x13d3   :  { %3060 = vrsqrt.f32 %v1760_v23  ;;  %v2321_v23 = vld [vmem:[%s3985_s13 + $0x78] sm:$0xff] }
0x13d4   :  { %3062 = vpow2.f32 %v2297_v33  ;;  %v2916_v5 = vpack.c.bf16 %v2321_v23, %v2320_v43 }
0x13d5   :  { %3064 = vpow2.f32 %v2296_v26 }
0x13dc   :  { %v3059_v7 = vpop.eup %3058 }
0x13dd   :  { %v3061_v38 = vpop.eup %3060  ;;  %v1765_v4 = vmul.f32 %v3059_v7, %v2648_v27  ;;  %v2315_v27 = vld [vmem:[%s3985_s13 + $0x48] sm:$0xff] }
0x13de   :  { %v1764_v22 = vmul.f32 %v3061_v38, %v1666_v31  ;;  %v3063_v28 = vpop.eup %3062  ;;  %v2316_v31 = vld [vmem:[%s3985_s13 + $0x50] sm:$0xff]  ;;  %v2904_v39 = vpack.c.bf16 %v2315_v27, %v2314_v24 }
0x13df   :  { %1784 = vrot.lane.b32.xlu0 %v1765_v4, %s3112_s21  ;;  %v3065_v29 = vpop.eup %3064  ;;  %v1773_v30 = vadd.f32 1.0, %v3063_v28  ;;  %v2908_v45 = vpack.c.bf16 %v2317_v40, %v2316_v31 }
0x13e0   :  { %1782 = vrot.lane.b32.xlu1 %v1764_v22, %s3112_s21  ;;  %v1772_v25 = vadd.f32 1.0, %v3065_v29  ;;  %2905 = vmatprep.subr.bf16.mxu0 %v2904_v39 }
0x13e1   :  { %3066 = vrcp.f32 %v1773_v30 }
0x13e2   :  { %3068 = vrcp.f32 %v1772_v25 }
0x13eb   :  { %v3067_v34 = vpop.eup %3066 }
0x13ec   :  { %v3069_v35 = vpop.eup %3068  ;;  %v1779_v36 = vmul.f32 %v3067_v34, %v3698_v57 }
0x13ed   :  { %v1778_v1 = vmul.f32 %v3069_v35, %v3702_v62 }
0x1451   :  { %v1785_v41 = vpop.permute.xlu0 %1784 }
0x1452   :  { %v1789_v0 = vmul.f32 %v1785_v41, %v1779_v36  ;;  %v1783_v42 = vpop.permute.xlu1 %1782 }
0x1453   :  { %v1788_v44 = vmul.f32 %v1783_v42, %v1778_v1 }
0x1454   :  { %1799 = vrot.lane.b32.xlu0 %v1789_v0, %s3113_s22 }
0x1455   :  { %1797 = vrot.lane.b32.xlu1 %v1788_v44, %s3113_s22 }
0x14c6   :  { %v1800_v47 = vpop.permute.xlu0 %1799 }
0x14c7   :  { %v1798_v54 = vpop.permute.xlu1 %1797 }
0x14c8   :  { %2668 = vmatprep.mubr.msk.f32.mxu0 %vm86_vm0, %v1798_v54 }
0x14c9   :  { %2669 = vmatmul.mubr.msk.f32.vlgmr.msra.gmra.mrb[14].mxu0 %vm86_vm0, %v1800_v47 }
0x14ca   :  { %2907 = vmatpush3.bf16.msra.mxu0 %v2904_v39 }
0x14cb   :  { %2909 = vmatprep.subr.bf16.mxu0 %v2908_v45 }
0x14ce   :  { %2911 = vmatpush3.bf16.msra.mxu0 %v2908_v45 }
0x14cf   :  { %2913 = vmatprep.subr.bf16.mxu0 %v2912_v6 }
0x14d2   :  { %2915 = vmatpush3.bf16.msra.mxu0 %v2912_v6 }
0x14d3   :  { %2917 = vmatprep.subr.bf16.mxu0 %v2916_v5 }
0x14d6   :  { %2919 = vmatpush3.bf16.msra.mxu0 %v2916_v5 }
0x159c   :  { %v2670_v48 = vpop.f32.mrb[14].mxu0 }
0x159d   :  { %v3877_v50 = vadd.f32 %v2670_v48, %v3668_v17  ;;  %v1871_v57 = vpop.f32.mrb[15].mxu0  ;;  %v2306_v17 = vld [vmem:[%s3984_s12 + $0x20] sm:$0xff] }
0x159e   :  { %v3880_v62 = vadd.f32 %v1871_v57, %v3671_v21  ;;  %v2307_v21 = vld [vmem:[%s3984_s12 + $0x28] sm:$0xff]  ;;  %v2139_v57 = vld [vmem:[%s3987_s15] sm:$0xff] }
0x159f   :  { %v1883_v61 = vmul.f32 %v3877_v50, %v3877_v50  ;;  %v2896_v10 = vpack.c.bf16 %v2307_v21, %v2306_v17 }
0x15a0   :  { %v1882_v9 = vmul.f32 %v3880_v62, %v3880_v62 }
0x15a1   :  { %v1887_v58 = vsel %vm86_vm0, %v1883_v61, 0.0  ;;  %2897 = vmatprep.subr.bf16.mxu1 %v2896_v10  ;;  %v2140_v61 = vld [vmem:[%s3987_s15 + $0x8] sm:$0xff] }
0x15a2   :  { %1888 = vadd.xlane.f32.xlu0 %v1887_v58  ;;  %v1884_v60 = vsel %vm86_vm0, %v1882_v9, 0.0  ;;  %2899 = vmatpush3.bf16.msra.mxu1 %v2896_v10  ;;  %v2142_v9 = vld [vmem:[%s3987_s15 + $0x18] sm:$0xff] }
0x15a3   :  { %1885 = vadd.xlane.f32.xlu1 %v1884_v60  ;;  %2901 = vmatprep.subr.bf16.mxu1 %v2900_v51 }
0x15a6   :  { %2903 = vmatpush3.bf16.msra.mxu1 %v2900_v51 }
0x162f   :  { %v1889_v11 = vpop.xlane.xlu0 %1888 }
0x1630   :  { %v1891_v16 = vmul.f32 0.03125, %v1889_v11  ;;  %v1886_v18 = vpop.xlane.xlu1 %1885 }
0x1631   :  { %v1890_v53 = vmul.f32 0.03125, %v1886_v18  ;;  %v2324_v18 = vld [vmem:[%s3986_s14] ss:$0 sm:$0xff] }
0x1632   :  { %v1893_v12 = vadd.f32 1e-06, %v1891_v16 }
0x1633   :  { %v1892_v13 = vadd.f32 1e-06, %v1890_v53 }
0x1634   :  { %3070 = vrsqrt.f32 %v1893_v12 }
0x1635   :  { %3072 = vrsqrt.f32 %v1892_v13 }
0x163e   :  { %v3071_v55 = vpop.eup %3070 }
0x163f   :  { %v3073_v52 = vpop.eup %3072  ;;  %v1897_v14 = vmul.f32 %v3071_v55, %v3877_v50 }
0x1640   :  { %v1896_v19 = vmul.f32 %v3073_v52, %v3880_v62 }
0x1641   :  { %v1907_v20 = vmul.f32 %v2305_v8, %v1897_v14 }
0x1642   :  { %v1906_v15 = vmul.f32 %v2305_v8, %v1896_v19 }
0x1644   :  { %2679 = vmatprep.mubr.msk.f32.mxu1 %vm86_vm0, %v1906_v15 }
0x1645   :  { %2680 = vmatmul.mubr.msk.f32.vlgmr.msra.gmra.mrb[12].mxu1 %vm86_vm0, %v1907_v20 }
0x1718   :  { %v2681_v32 = vpop.f32.mrb[12].mxu1 }
0x1719   :  { %2012 = vrot.lane.b32.xlu1 %v2681_v32, %s3118_s27  ;;  %v1985_v56 = vpop.f32.mrb[13].mxu1  ;;  %v2313_v46 = vmul.f32 -1.442695, %v2681_v32 }
0x171a   :  { %2010 = vrot.lane.b32.xlu0 %v1985_v56, %s3118_s27  ;;  %v2312_v37 = vmul.f32 -1.442695, %v1985_v56 }
0x171b   :  { %3074 = vpow2.f32 %v2313_v46 }
0x171c   :  { %3076 = vpow2.f32 %v2312_v37 }
0x1725   :  { %v3075_v59 = vpop.eup %3074 }
0x1726   :  { %v3077_v7 = vpop.eup %3076  ;;  %v2001_v38 = vadd.f32 1.0, %v3075_v59 }
0x1727   :  { %v2000_v4 = vadd.f32 1.0, %v3077_v7 }
0x1728   :  { %3078 = vrcp.f32 %v2001_v38 }
0x1729   :  { %3080 = vrcp.f32 %v2000_v4 }
0x1732   :  { %v3079_v22 = vpop.eup %3078 }
0x1733   :  { %v3081_v33 = vpop.eup %3080  ;;  %v2007_v26 = vmul.f32 %v3079_v22, %v2681_v32 }
0x1734   :  { %v2006_v29 = vmul.f32 %v3081_v33, %v1985_v56 }
0x178b   :  { %v2013_v28 = vpop.permute.xlu1 %2012 }
0x178c   :  { %v2017_v30 = vmul.f32 %v2013_v28, %v2007_v26  ;;  %v2011_v25 = vpop.permute.xlu0 %2010 }
0x178d   :  { %v2016_v34 = vmul.f32 %v2011_v25, %v2006_v29 }
0x178e   :  { %2031 = vrot.lane.b32.xlu0 %v2017_v30, %s3118_s27 }
0x178f   :  { %2029 = vrot.lane.b32.xlu1 %v2016_v34, %s3118_s27 }
0x1800   :  { %v2032_v36 = vpop.permute.xlu0 %2031 }
0x1801   :  { %v2030_v35 = vpop.permute.xlu1 %2029 }
0x1802   :  { %2698 = vmatprep.mubr.msk.f32.mxu0 %vm500_vm3, %v2030_v35 }
0x1803   :  { %2699 = vmatmul.mubr.msk.f32.vlgmr.msra.gmra.mrb[16].mxu0 %vm500_vm3, %v2032_v36 }
0x18d6   :  { %v2700_v41 = vpop.f32.mrb[16].mxu0 }
0x18d7   :  { %v2113_v1 = vadd.f32 %v2700_v41, %v3877_v50  ;;  %v2103_v0 = vpop.f32.mrb[17].mxu0  ;;  %v2141_v50 = vld [vmem:[%s3987_s15 + $0x10] sm:$0xff]  ;;  %s3119_s15 = smov [#allocation2]  }
0x18d8   :  { %v2112_v42 = vadd.f32 %v2103_v0, %v3880_v62  ;;  %v2920_v62 = vpack.c.bf16 %v2140_v61, %v2139_v57  ;;  %v2924_v58 = vpack.c.bf16 %v2142_v9, %v2141_v50  ;;  %s2231_s0 = sshll.u32 %s3119_s15, 4  ;;  %s2232_s0 = int_to_ptr.vmem [resolvable:$true] %s2231_s0 }
0x18d9   :  { %v2115_v44 = vmul.f32 %v2113_v1, %v2113_v1  ;;  %s3088_s17 = scalar_lea.vmem %s2232_s0, 256  ;;  %p3093_p1 = scmp.lt.s32.totalorder %s2232_s0, %s2232_s0 }
0x18da   :  { %v2114_v54 = vmul.f32 %v2112_v42, %v2112_v42  ;;  %2921 = vmatprep.subr.bf16.mxu1 %v2920_v62  ;;  %p3089_p0 = scmp.ne.s32.totalorder %s2232_s0, %s3088_s17  ;;  %p3094_p2 = scmp.lt.s32.totalorder %s3088_s17, %s3088_s17 }
0x18db   :  { %v2119_v47 = vsel %vm86_vm0, %v2115_v44, 0.0  ;;  %2923 = vmatpush3.bf16.msra.mxu1 %v2920_v62 }
0x18dc   :  { %2120 = vadd.xlane.f32.xlu0 %v2119_v47  ;;  %v2116_v48 = vsel %vm86_vm0, %v2114_v54, 0.0  ;;  %2925 = vmatprep.subr.bf16.mxu1 %v2924_v58  ;;  %p3095_p3 = por %p3094_p2, %p3093_p1 }
0x18dd   :  { %2117 = vadd.xlane.f32.xlu1 %v2116_v48 }
0x18de   :  { %p3096_p4 = pnand %p3095_p3, %p3089_p0 }
0x18df   :  { %2927 = vmatpush3.bf16.msra.mxu1 %v2924_v58 }
0x1969   :  { %v2121_v60 = vpop.xlane.xlu0 %2120 }
0x196a   :  { %v2123_v17 = vmul.f32 0.03125, %v2121_v60  ;;  %v2118_v21 = vpop.xlane.xlu1 %2117 }
0x196b   :  { %v2122_v63 = vmul.f32 0.03125, %v2118_v21 }
0x196c   :  { %v2125_v10 = vadd.f32 1e-06, %v2123_v17 }
0x196d   :  { %v2124_v2 = vadd.f32 1e-06, %v2122_v63 }
0x196e   :  { %3082 = vrsqrt.f32 %v2125_v10 }
0x196f   :  { %3084 = vrsqrt.f32 %v2124_v2 }
0x1978   :  { %v3083_v51 = vpop.eup %3082 }
0x1979   :  { %v3085_v11 = vpop.eup %3084  ;;  %v2129_v16 = vmul.f32 %v3083_v51, %v2113_v1 }
0x197a   :  { %v2128_v53 = vmul.f32 %v3085_v11, %v2112_v42 }
0x197b   :  { %v2138_v13 = vmul.f32 %v2324_v18, %v2129_v16 }
0x197c   :  { %v2137_v12 = vmul.f32 %v2324_v18, %v2128_v53 }
0x197e   :  { %2709 = vmatprep.mubr.msk.f32.mxu1 %vm86_vm0, %v2137_v12 }
0x197f   :  { %2710 = vmatmul.mubr.msk.f32.vlgmr.msra.gmra.mrb[14].mxu1 %vm86_vm0, %v2138_v13 }
0x1a52   :  { %v2711_v55 = vpop.f32.mrb[14].mxu1 }
0x1a53   :  { %2225 = vst.msk [vmem:[#allocation2 + $0x8] sm:$0xff] %vm500_vm3, %v2711_v55  ;;  %v2215_v52 = vpop.f32.mrb[15].mxu1 }
0x1a54   :  { %2224 = vst.msk [vmem:[#allocation2] sm:$0xff] %vm500_vm3, %v2215_v52 }
0x1a55   :  { %3099 = shalt.err (!%p3096_p4)
}
0x1a56   :  { %s3100_s7 = scalar_lea.hbm %s3988_s16, 256 }
0x1a57   :  { %p3101_p5 = scmp.ne.s32.totalorder %s3988_s16, %s3100_s7  ;;  %p3104_p6 = scmp.lt.u32.totalorder %s3100_s7, %s3988_s16 }
0x1a59   :  { %p3106_p7 = pnand %p3104_p6, %p3101_p5 }
0x1a5b   :  { %3109 = shalt.err (!%p3106_p7)
}
0x1a5c   :  { %s3120_s11 = smov 128   ;;  %s3121_s28 = smov 8  }
0x1a5d   :  { %2237 = dma.vmem_to_hbm [thread:$0]  %s2232_s0, 256, %s3988_s16, [#allocation3], %s3120_s11, %s3120_s11, %s3121_s28  }
0x1a5e   :  { %3110 = dma.done.wait [#allocation3], 256  }
0x1a5f   :  { %3111 = vsyncadd [#allocation3], 4294967040 }
0x1a60   :  { %2241 = vsyncpa [#allocation3], 1 }

</bundles_post_ra>
